<compile_context>
chip_gen: v6e
topology: v6e:2x2x1
jax: 0.10.0
libtpu: 0.0.40
codegen_flags: <defaults>
</compile_context>

<pallas_src>
import math
from functools import lru_cache

import jax
import jax.numpy as jnp
from jax.experimental import pallas as pl
from jax.experimental.pallas import tpu as pltpu

# ---------------- synthetic config (small, consistent with the module) ------
VOCAB = 30            # vocab size == class_num (autoregressive LM head)
HIDDEN = 32           # config['hidden_size']
N_LAYERS = 2
N_HEADS = 4
HEAD_DIM = HIDDEN // N_HEADS
INTERMEDIATE = 64
MAX_POS = 16
CLASS_NUM = VOCAB     # config['class_num']
CLS_PAD = 128         # classifier padded to a full 128-lane tile
PAD_ID = 0            # self.bert.config.pad_token_id
LN_EPS = 1e-12        # BERT LayerNorm eps
NEG_INF = -1e9        # bias for padded (non-existent) classes
ATTN_SCALE = 1.0 / math.sqrt(HEAD_DIM)

# ---------- packed-parameter blob layout -------------------------------------
# W blob (bf16, 128 lanes): per layer [qkv_w(32r) | ao_w(32r) | i_w(32r) |
#   o_w(64r)] then cls_w_pad(32r).  All segments 8-sublane aligned.
LAYER_W_ROWS = 3 * HIDDEN + INTERMEDIATE          # 160
R_W = N_LAYERS * LAYER_W_ROWS + HIDDEN            # 352
# V blob (f32, 128 lanes): row0 emb_ln_g, row1 emb_ln_b, then per layer 8 rows
#   [qkv_b, ao_b, attn_ln_g, attn_ln_b, i_b, o_b, out_ln_g, out_ln_b],
#   then cls_b_pad; padded to a multiple of 8 rows.
CLS_B_ROW = 2 + 8 * N_LAYERS                      # 18
R_V = ((CLS_B_ROW + 1 + 7) // 8) * 8              # 24

LAYER_VKEYS = ("qkv_b", "ao_b", "attn_ln_g", "attn_ln_b",
               "i_b", "o_b", "out_ln_g", "out_ln_b")


# ---------------- in-kernel helpers ------------------------------------------

def _layernorm(x, g, b):
    mu = jnp.mean(x, axis=-1, keepdims=True)
    var = jnp.mean((x - mu) ** 2, axis=-1, keepdims=True)
    return (x - mu) * jax.lax.rsqrt(var + LN_EPS) * g + b


def _gelu(x):
    # TODO(synk): HF BERT uses exact erf-GELU; tanh approximation used because
    # lax.erf lowering on Mosaic is not guaranteed.
    c = math.sqrt(2.0 / math.pi)
    return 0.5 * x * (1.0 + jnp.tanh(c * (x + 0.044715 * x * x * x)))


# ---------------- fused whole-model kernel -----------------------------------

@lru_cache(maxsize=None)
def make_fused_forward(B, S):
    assert S % 8 == 0, "seq length must be a multiple of 8 (sublane tile)"
    H = HIDDEN

    def kernel(x_ref, amask_ref, labels_ref, w_ref, v_ref,
               logits_ref, loss_ref):
        def vrow(r, n):                              # (1, n) f32 vector
            return v_ref[r:r + 1, 0:n]

        # -------- embeddings LayerNorm (gather+add done in XLA glue) --------
        x = _layernorm(x_ref[...], vrow(0, H), vrow(1, H))       # (S, H) f32

        # additive attention mask, stacked once for all heads: (N_HEADS*S, S)
        amask = amask_ref[...]                                   # (S, S)
        amask_stack = jnp.concatenate([amask] * N_HEADS, axis=0)

        # -------- encoder layers (weights VMEM-resident, ctx in registers) --
        for l in range(N_LAYERS):
            wb = l * LAYER_W_ROWS
            vb = 2 + l * 8
            qkv_w = w_ref[wb:wb + H, :]                          # (H,128) bf16
            ao_w = w_ref[wb + H:wb + 2 * H, :]
            i_w = w_ref[wb + 2 * H:wb + 3 * H, :]
            o_w = w_ref[wb + 3 * H:wb + 3 * H + INTERMEDIATE, :]

            # fused QKV projection: one (S,H)x(H,128) bf16 matmul, f32 accum
            qkv = jnp.dot(x.astype(jnp.bfloat16), qkv_w,
                          preferred_element_type=jnp.float32)
            qkv = qkv[:, 0:3 * H] + vrow(vb + 0, 3 * H)          # (S, 3H)

            # per-head scores stacked along sublanes -> ONE softmax pass
            scores, vs = [], []
            for h in range(N_HEADS):
                c0 = h * HEAD_DIM
                qh = qkv[:, c0:c0 + HEAD_DIM]
                kh = qkv[:, H + c0:H + c0 + HEAD_DIM]
                vs.append(qkv[:, 2 * H + c0:2 * H + c0 + HEAD_DIM])
                scores.append(jnp.dot(qh, kh.T,
                                      preferred_element_type=jnp.float32))
            s_all = jnp.concatenate(scores, axis=0) * ATTN_SCALE + amask_stack
            mx = jnp.max(s_all, axis=-1, keepdims=True)
            e = jnp.exp(s_all - mx)
            p_all = e * pl.reciprocal(jnp.sum(e, axis=-1, keepdims=True),
                                      approx=True)

            # per-head PV matmuls; head tiles lane-concatenated in registers
            ctx = jnp.concatenate(
                [jnp.dot(p_all[h * S:(h + 1) * S, :], vs[h],
                         preferred_element_type=jnp.float32)
                 for h in range(N_HEADS)], axis=1)               # (S, H)

            attn_out = (jnp.dot(ctx.astype(jnp.bfloat16), ao_w,
                                preferred_element_type=jnp.float32)[:, 0:H]
                        + vrow(vb + 1, H))
            x = _layernorm(attn_out + x, vrow(vb + 2, H), vrow(vb + 3, H))

            inter = _gelu(
                jnp.dot(x.astype(jnp.bfloat16), i_w,
                        preferred_element_type=jnp.float32)[:, 0:INTERMEDIATE]
                + vrow(vb + 4, INTERMEDIATE))
            ffn = (jnp.dot(inter.astype(jnp.bfloat16), o_w,
                           preferred_element_type=jnp.float32)[:, 0:H]
                   + vrow(vb + 5, H))
            x = _layernorm(ffn + x, vrow(vb + 6, H), vrow(vb + 7, H))

        # -------- classifier head (128-lane padded => lane-dense stores) ----
        # TODO(synk): nn.Dropout(0.1) is identity in eval mode; training-mode
        # stochastic dropout (pltpu.prng_*) intentionally omitted.
        cls_w = w_ref[N_LAYERS * LAYER_W_ROWS:N_LAYERS * LAYER_W_ROWS + H, :]
        cls_b = v_ref[CLS_B_ROW:CLS_B_ROW + 1, :]     # (1,128), -1e9 on pads
        logits = jnp.dot(x.astype(jnp.bfloat16), cls_w,
                         preferred_element_type=jnp.float32) + cls_b
        logits_ref[...] = logits                                  # (S, 128)

        # -------- shifted cross-entropy, packed lane-dense ------------------
        labels = labels_ref[...]                                  # (S, 1) i32
        mrow = jnp.max(logits, axis=-1, keepdims=True)
        lse = jnp.log(jnp.sum(jnp.exp(logits - mrow), axis=-1,
                              keepdims=True)) + mrow
        col = jax.lax.broadcasted_iota(jnp.int32, logits.shape, 1)
        picked = jnp.sum(jnp.where(col == labels, logits, 0.0),
                         axis=-1, keepdims=True)
        nll = lse - picked                                        # (S, 1)
        valid = (labels != PAD_ID).astype(jnp.float32)            # (S, 1)
        # lane0 = nll*valid, lane1 = valid, rest 0 — reduced in the glue
        loss_ref[...] = jnp.where(col == 0, nll * valid,
                                  jnp.where(col == 1, valid, 0.0))

    return pl.pallas_call(
        kernel,
        grid=(B,),
        in_specs=[
            pl.BlockSpec((S, HIDDEN), lambda b: (b, 0)),     # x rows
            pl.BlockSpec((S, S), lambda b: (b, 0)),          # additive mask
            pl.BlockSpec((S, 1), lambda b: (b, 0)),          # shifted labels
            pl.BlockSpec((R_W, 128), lambda b: (0, 0)),      # weight blob
            pl.BlockSpec((R_V, 128), lambda b: (0, 0)),      # vector blob
        ],
        out_specs=[
            pl.BlockSpec((S, CLS_PAD), lambda b: (b, 0)),    # padded logits
            pl.BlockSpec((S, CLS_PAD), lambda b: (b, 0)),    # loss parts
        ],
        out_shape=(jax.ShapeDtypeStruct((B * S, CLS_PAD), jnp.float32),
                   jax.ShapeDtypeStruct((B * S, CLS_PAD), jnp.float32)),
        compiler_params=pltpu.CompilerParams(
            dimension_semantics=("parallel",)),
    )


# ---------------- parameters (deterministic synthetic init) ------------------

def init_params(key):
    keys = iter(jax.random.split(key, 64))

    def nrm(shape):
        return 0.02 * jax.random.normal(next(keys), shape, jnp.float32)

    def zeros(shape):
        return jnp.zeros(shape, jnp.float32)

    def ones(shape):
        return jnp.ones(shape, jnp.float32)

    cls_w = nrm((HIDDEN, CLASS_NUM))
    cls_w_pad = jnp.zeros((HIDDEN, CLS_PAD), jnp.float32
                          ).at[:, :CLASS_NUM].set(cls_w)
    # padded classes get a huge negative bias so they never affect softmax/CE
    cls_b_pad = jnp.full((1, CLS_PAD), NEG_INF, jnp.float32
                         ).at[:, :CLASS_NUM].set(0.0)

    params = {
        "word_emb": nrm((VOCAB, HIDDEN)),
        "pos_emb": nrm((MAX_POS, HIDDEN)),
        "type_emb": nrm((2, HIDDEN)),
        "emb_ln_g": ones((1, HIDDEN)), "emb_ln_b": zeros((1, HIDDEN)),
        "layers": [],
        "cls_w_pad": cls_w_pad, "cls_b_pad": cls_b_pad,
    }
    for _ in range(N_LAYERS):
        params["layers"].append({
            "qkv_w": nrm((HIDDEN, 3 * HIDDEN)), "qkv_b": zeros((1, 3 * HIDDEN)),
            "ao_w": nrm((HIDDEN, HIDDEN)), "ao_b": zeros((1, HIDDEN)),
            "attn_ln_g": ones((1, HIDDEN)), "attn_ln_b": zeros((1, HIDDEN)),
            "i_w": nrm((HIDDEN, INTERMEDIATE)), "i_b": zeros((1, INTERMEDIATE)),
            "o_w": nrm((INTERMEDIATE, HIDDEN)), "o_b": zeros((1, HIDDEN)),
            "out_ln_g": ones((1, HIDDEN)), "out_ln_b": zeros((1, HIDDEN)),
        })
    return params


def pack_params(params):
    """Concatenate the ~31 small parameter arrays into 2 DMA-friendly blobs."""
    def pad128(a):
        return jnp.pad(a, ((0, 0), (0, 128 - a.shape[1])))

    wrows = []
    for layer in params["layers"]:
        wrows.extend([pad128(layer["qkv_w"]), pad128(layer["ao_w"]),
                      pad128(layer["i_w"]), pad128(layer["o_w"])])
    wrows.append(params["cls_w_pad"])
    wblob = jnp.concatenate(wrows, axis=0).astype(jnp.bfloat16)   # (R_W, 128)
    assert wblob.shape == (R_W, 128)

    vrows = [pad128(params["emb_ln_g"]), pad128(params["emb_ln_b"])]
    for layer in params["layers"]:
        vrows.extend(pad128(layer[k]) for k in LAYER_VKEYS)
    vrows.append(params["cls_b_pad"])
    vblob = jnp.concatenate(vrows, axis=0)
    vblob = jnp.pad(vblob, ((0, R_V - vblob.shape[0]), (0, 0))
                    ).astype(jnp.float32)                          # (R_V, 128)
    return wblob, vblob


# ---------------- forward pass -----------------------------------------------

def model_forward(params, blobs, input_ids, attention_mask=None, labels=None):
    """Single fused pallas_call; returns (logits, loss_or_None)."""
    B, S = input_ids.shape
    if attention_mask is None:
        attention_mask = jnp.ones((B, S), jnp.int32)
    wblob, vblob = blobs

    # embedding gather + positional/type add: plain-JAX glue (one fused op)
    we = jnp.take(params["word_emb"], input_ids, axis=0)          # (B,S,H)
    pe = params["pos_emb"][:S][None, :, :]                        # (1,S,H)
    te = params["type_emb"][0][None, None, :]                     # (1,1,H)
    x = (we + pe + te).reshape(B * S, HIDDEN)

    # BERT extended additive mask, pre-broadcast to (B*S, S) once in the glue
    add = (1.0 - attention_mask.astype(jnp.float32)) * -10000.0   # (B, S)
    amask_rows = jnp.broadcast_to(add[:, None, :], (B, S, S)).reshape(B * S, S)

    # per-row shifted labels (label for row (b, t) is labels[b, t+1]; last
    # position gets PAD_ID so it is ignored — matches logits[:, :-1] vs
    # labels[:, 1:] with ignore_index=PAD_ID).
    if labels is None:
        labels_rows = jnp.full((B * S, 1), PAD_ID, jnp.int32)
    else:
        shifted = jnp.concatenate(
            [labels[:, 1:], jnp.full((B, 1), PAD_ID, labels.dtype)], axis=1)
        labels_rows = shifted.reshape(B * S, 1).astype(jnp.int32)

    logits_pad, loss_parts = make_fused_forward(B, S)(
        x, amask_rows, labels_rows, wblob, vblob)

    logits = logits_pad.reshape(B, S, CLS_PAD)[:, :, :CLASS_NUM]
    if labels is None:
        return logits, None

    num = jnp.sum(loss_parts[:, 0])
    # TODO(synk): torch CrossEntropyLoss returns NaN when every label is
    # ignore_index; denominator is clamped to 1 here instead.
    den = jnp.maximum(jnp.sum(loss_parts[:, 1]), 1.0)
    return logits, num / den


# ---------------- main --------------------------------------------------------

if __name__ == "__main__":
    root = jax.random.PRNGKey(0)
    pkey, dkey = jax.random.split(root)
    params = init_params(pkey)
    blobs = pack_params(params)

    B, S = 2, 8
    input_ids = jax.random.randint(dkey, (B, S), 1, VOCAB).astype(jnp.int32)
    attention_mask = jnp.array([[1, 1, 1, 1, 1, 1, 1, 1],
                                [1, 1, 1, 1, 1, 1, 0, 0]], dtype=jnp.int32)
    input_ids = input_ids * attention_mask        # padded positions -> PAD_ID
    labels = input_ids

    # ONE fused kernel invocation produces both logits and the LM loss.
    logits, loss = model_forward(params, blobs, input_ids, attention_mask,
                                 labels)
    jax.block_until_ready((logits, loss))

    assert logits.shape == (B, S, CLASS_NUM)
    assert loss.shape == ()
    assert bool(jnp.isfinite(loss))
    print("KERNEL_OK")
</pallas_src>

<mosaic_0001>
module attributes {stable_mosaic.version = 11 : i64} {
  func.func @kernel(%arg0: i32, %arg1: memref<8x32xf32, #tpu.memory_space<vmem>>, %arg2: memref<8x8xf32, #tpu.memory_space<vmem>>, %arg3: memref<8x1xi32, #tpu.memory_space<vmem>>, %arg4: memref<352x128xbf16, #tpu.memory_space<vmem>>, %arg5: memref<24x128xf32, #tpu.memory_space<vmem>>, %arg6: memref<8x128xf32, #tpu.memory_space<vmem>>, %arg7: memref<8x128xf32, #tpu.memory_space<vmem>>) attributes {dimension_semantics = [#tpu.dimension_semantics<parallel>], iteration_bounds = array<i64: 2>, scalar_prefetch = 0 : i64, scratch_operands = 0 : i64, tpu.core_type = #tpu.core_type<tc>, window_params = [{transform_indices = @transform_0, window_bounds = array<i64: 8, 32>}, {transform_indices = @transform_1, window_bounds = array<i64: 8, 8>}, {transform_indices = @transform_2, window_bounds = array<i64: 8, 1>}, {pipeline_mode = #tpu.pipeline_mode<synchronous>, transform_indices = @transform_3, window_bounds = array<i64: 352, 128>}, {pipeline_mode = #tpu.pipeline_mode<synchronous>, transform_indices = @transform_4, window_bounds = array<i64: 24, 128>}, {transform_indices = @transform_5, window_bounds = array<i64: 8, 128>}, {transform_indices = @transform_6, window_bounds = array<i64: 8, 128>}]} {
    %c0 = arith.constant 0 : index
    %c0_0 = arith.constant 0 : index
    %0 = vector.load %arg1[%c0, %c0_0] : memref<8x32xf32, #tpu.memory_space<vmem>>, vector<8x32xf32>
    %c0_1 = arith.constant 0 : index
    %c0_2 = arith.constant 0 : index
    %1 = vector.load %arg5[%c0_1, %c0_2] : memref<24x128xf32, #tpu.memory_space<vmem>>, vector<1x32xf32>
    %c1 = arith.constant 1 : index
    %c0_3 = arith.constant 0 : index
    %2 = vector.load %arg5[%c1, %c0_3] : memref<24x128xf32, #tpu.memory_space<vmem>>, vector<1x32xf32>
    %cst = arith.constant dense<0.000000e+00> : vector<8xf32>
    %3 = vector.multi_reduction <add>, %0, %cst [1] : vector<8x32xf32> to vector<8xf32>
    %4 = vector.shape_cast %3 : vector<8xf32> to vector<8x1xf32>
    %cst_4 = arith.constant 3.200000e+01 : f32
    %5 = vector.broadcast %cst_4 : f32 to vector<8x1xf32>
    %6 = arith.divf %4, %5 : vector<8x1xf32>
    %7 = vector.broadcast %6 : vector<8x1xf32> to vector<8x32xf32>
    %8 = arith.subf %0, %7 : vector<8x32xf32>
    %9 = arith.mulf %8, %8 : vector<8x32xf32>
    %cst_5 = arith.constant dense<0.000000e+00> : vector<8xf32>
    %10 = vector.multi_reduction <add>, %9, %cst_5 [1] : vector<8x32xf32> to vector<8xf32>
    %11 = vector.shape_cast %10 : vector<8xf32> to vector<8x1xf32>
    %cst_6 = arith.constant 3.200000e+01 : f32
    %12 = vector.broadcast %cst_6 : f32 to vector<8x1xf32>
    %13 = arith.divf %11, %12 : vector<8x1xf32>
    %14 = vector.broadcast %6 : vector<8x1xf32> to vector<8x32xf32>
    %15 = arith.subf %0, %14 : vector<8x32xf32>
    %cst_7 = arith.constant 9.99999996E-13 : f32
    %16 = vector.broadcast %cst_7 : f32 to vector<8x1xf32>
    %17 = arith.addf %13, %16 : vector<8x1xf32>
    %18 = math.rsqrt %17 : vector<8x1xf32>
    %19 = vector.broadcast %18 : vector<8x1xf32> to vector<8x32xf32>
    %20 = arith.mulf %15, %19 : vector<8x32xf32>
    %21 = vector.broadcast %1 : vector<1x32xf32> to vector<8x32xf32>
    %22 = arith.mulf %20, %21 : vector<8x32xf32>
    %23 = vector.broadcast %2 : vector<1x32xf32> to vector<8x32xf32>
    %24 = arith.addf %22, %23 : vector<8x32xf32>
    %c0_8 = arith.constant 0 : index
    %c0_9 = arith.constant 0 : index
    %25 = vector.load %arg2[%c0_8, %c0_9] : memref<8x8xf32, #tpu.memory_space<vmem>>, vector<8x8xf32>
    %26 = tpu.concatenate %25, %25, %25, %25 in 0 : vector<8x8xf32>, vector<8x8xf32>, vector<8x8xf32>, vector<8x8xf32> -> vector<32x8xf32>
    %c0_10 = arith.constant 0 : index
    %c0_11 = arith.constant 0 : index
    %27 = vector.load %arg4[%c0_10, %c0_11] : memref<352x128xbf16, #tpu.memory_space<vmem>>, vector<32x128xbf16>
    %c32 = arith.constant 32 : index
    %c0_12 = arith.constant 0 : index
    %28 = vector.load %arg4[%c32, %c0_12] : memref<352x128xbf16, #tpu.memory_space<vmem>>, vector<32x128xbf16>
    %c64 = arith.constant 64 : index
    %c0_13 = arith.constant 0 : index
    %29 = vector.load %arg4[%c64, %c0_13] : memref<352x128xbf16, #tpu.memory_space<vmem>>, vector<32x128xbf16>
    %c96 = arith.constant 96 : index
    %c0_14 = arith.constant 0 : index
    %30 = vector.load %arg4[%c96, %c0_14] : memref<352x128xbf16, #tpu.memory_space<vmem>>, vector<64x128xbf16>
    %31 = arith.truncf %24 : vector<8x32xf32> to vector<8x32xbf16>
    %cst_15 = arith.constant dense<0.000000e+00> : vector<8x128xf32>
    %32 = tpu.matmul %31, %27, %cst_15 {dimension_numbers = #tpu.dot_dimension_numbers<[1], [0], [0], [1], [0, 0, 1, 1], [], []>} : vector<8x32xbf16>, vector<32x128xbf16>, vector<8x128xf32> -> vector<8x128xf32>
    %33 = vector.extract_strided_slice %32 {offsets = [0, 0], sizes = [8, 96], strides = [1, 1]} : vector<8x128xf32> to vector<8x96xf32>
    %c2 = arith.constant 2 : index
    %c0_16 = arith.constant 0 : index
    %34 = vector.load %arg5[%c2, %c0_16] : memref<24x128xf32, #tpu.memory_space<vmem>>, vector<1x96xf32>
    %35 = vector.broadcast %34 : vector<1x96xf32> to vector<8x96xf32>
    %36 = arith.addf %33, %35 : vector<8x96xf32>
    %37 = vector.extract_strided_slice %36 {offsets = [0, 0], sizes = [8, 8], strides = [1, 1]} : vector<8x96xf32> to vector<8x8xf32>
    %38 = vector.extract_strided_slice %36 {offsets = [0, 32], sizes = [8, 8], strides = [1, 1]} : vector<8x96xf32> to vector<8x8xf32>
    %39 = vector.extract_strided_slice %36 {offsets = [0, 64], sizes = [8, 8], strides = [1, 1]} : vector<8x96xf32> to vector<8x8xf32>
    %40 = tpu.transpose %38, [1, 0] : vector<8x8xf32> -> vector<8x8xf32>
    %cst_17 = arith.constant dense<0.000000e+00> : vector<8x8xf32>
    %41 = tpu.matmul %37, %40, %cst_17 {dimension_numbers = #tpu.dot_dimension_numbers<[1], [0], [0], [1], [0, 0, 1, 1], [], []>} : vector<8x8xf32>, vector<8x8xf32>, vector<8x8xf32> -> vector<8x8xf32>
    %42 = vector.extract_strided_slice %36 {offsets = [0, 8], sizes = [8, 8], strides = [1, 1]} : vector<8x96xf32> to vector<8x8xf32>
    %43 = vector.extract_strided_slice %36 {offsets = [0, 40], sizes = [8, 8], strides = [1, 1]} : vector<8x96xf32> to vector<8x8xf32>
    %44 = vector.extract_strided_slice %36 {offsets = [0, 72], sizes = [8, 8], strides = [1, 1]} : vector<8x96xf32> to vector<8x8xf32>
    %45 = tpu.transpose %43, [1, 0] : vector<8x8xf32> -> vector<8x8xf32>
    %cst_18 = arith.constant dense<0.000000e+00> : vector<8x8xf32>
    %46 = tpu.matmul %42, %45, %cst_18 {dimension_numbers = #tpu.dot_dimension_numbers<[1], [0], [0], [1], [0, 0, 1, 1], [], []>} : vector<8x8xf32>, vector<8x8xf32>, vector<8x8xf32> -> vector<8x8xf32>
    %47 = vector.extract_strided_slice %36 {offsets = [0, 16], sizes = [8, 8], strides = [1, 1]} : vector<8x96xf32> to vector<8x8xf32>
    %48 = vector.extract_strided_slice %36 {offsets = [0, 48], sizes = [8, 8], strides = [1, 1]} : vector<8x96xf32> to vector<8x8xf32>
    %49 = vector.extract_strided_slice %36 {offsets = [0, 80], sizes = [8, 8], strides = [1, 1]} : vector<8x96xf32> to vector<8x8xf32>
    %50 = tpu.transpose %48, [1, 0] : vector<8x8xf32> -> vector<8x8xf32>
    %cst_19 = arith.constant dense<0.000000e+00> : vector<8x8xf32>
    %51 = tpu.matmul %47, %50, %cst_19 {dimension_numbers = #tpu.dot_dimension_numbers<[1], [0], [0], [1], [0, 0, 1, 1], [], []>} : vector<8x8xf32>, vector<8x8xf32>, vector<8x8xf32> -> vector<8x8xf32>
    %52 = vector.extract_strided_slice %36 {offsets = [0, 24], sizes = [8, 8], strides = [1, 1]} : vector<8x96xf32> to vector<8x8xf32>
    %53 = vector.extract_strided_slice %36 {offsets = [0, 56], sizes = [8, 8], strides = [1, 1]} : vector<8x96xf32> to vector<8x8xf32>
    %54 = vector.extract_strided_slice %36 {offsets = [0, 88], sizes = [8, 8], strides = [1, 1]} : vector<8x96xf32> to vector<8x8xf32>
    %55 = tpu.transpose %53, [1, 0] : vector<8x8xf32> -> vector<8x8xf32>
    %cst_20 = arith.constant dense<0.000000e+00> : vector<8x8xf32>
    %56 = tpu.matmul %52, %55, %cst_20 {dimension_numbers = #tpu.dot_dimension_numbers<[1], [0], [0], [1], [0, 0, 1, 1], [], []>} : vector<8x8xf32>, vector<8x8xf32>, vector<8x8xf32> -> vector<8x8xf32>
    %57 = tpu.concatenate %41, %46, %51, %56 in 0 : vector<8x8xf32>, vector<8x8xf32>, vector<8x8xf32>, vector<8x8xf32> -> vector<32x8xf32>
    %cst_21 = arith.constant 0.353553385 : f32
    %58 = vector.broadcast %cst_21 : f32 to vector<32x8xf32>
    %59 = arith.mulf %57, %58 : vector<32x8xf32>
    %60 = arith.addf %59, %26 : vector<32x8xf32>
    %cst_22 = arith.constant dense<0xFF800000> : vector<32xf32>
    %61 = vector.multi_reduction <maximumf>, %60, %cst_22 [1] : vector<32x8xf32> to vector<32xf32>
    %62 = vector.shape_cast %61 : vector<32xf32> to vector<32x1xf32>
    %63 = vector.broadcast %62 : vector<32x1xf32> to vector<32x8xf32>
    %64 = arith.subf %60, %63 : vector<32x8xf32>
    %65 = math.exp %64 : vector<32x8xf32>
    %cst_23 = arith.constant dense<0.000000e+00> : vector<32xf32>
    %66 = vector.multi_reduction <add>, %65, %cst_23 [1] : vector<32x8xf32> to vector<32xf32>
    %67 = vector.shape_cast %66 : vector<32xf32> to vector<32x1xf32>
    %68 = tpu.reciprocal %67 {approx = true} : vector<32x1xf32> -> vector<32x1xf32>
    %69 = vector.broadcast %68 : vector<32x1xf32> to vector<32x8xf32>
    %70 = arith.mulf %65, %69 : vector<32x8xf32>
    %71 = vector.extract_strided_slice %70 {offsets = [0, 0], sizes = [8, 8], strides = [1, 1]} : vector<32x8xf32> to vector<8x8xf32>
    %cst_24 = arith.constant dense<0.000000e+00> : vector<8x8xf32>
    %72 = tpu.matmul %71, %39, %cst_24 {dimension_numbers = #tpu.dot_dimension_numbers<[1], [0], [0], [1], [0, 0, 1, 1], [], []>} : vector<8x8xf32>, vector<8x8xf32>, vector<8x8xf32> -> vector<8x8xf32>
    %73 = vector.extract_strided_slice %70 {offsets = [8, 0], sizes = [8, 8], strides = [1, 1]} : vector<32x8xf32> to vector<8x8xf32>
    %cst_25 = arith.constant dense<0.000000e+00> : vector<8x8xf32>
    %74 = tpu.matmul %73, %44, %cst_25 {dimension_numbers = #tpu.dot_dimension_numbers<[1], [0], [0], [1], [0, 0, 1, 1], [], []>} : vector<8x8xf32>, vector<8x8xf32>, vector<8x8xf32> -> vector<8x8xf32>
    %75 = vector.extract_strided_slice %70 {offsets = [16, 0], sizes = [8, 8], strides = [1, 1]} : vector<32x8xf32> to vector<8x8xf32>
    %cst_26 = arith.constant dense<0.000000e+00> : vector<8x8xf32>
    %76 = tpu.matmul %75, %49, %cst_26 {dimension_numbers = #tpu.dot_dimension_numbers<[1], [0], [0], [1], [0, 0, 1, 1], [], []>} : vector<8x8xf32>, vector<8x8xf32>, vector<8x8xf32> -> vector<8x8xf32>
    %77 = vector.extract_strided_slice %70 {offsets = [24, 0], sizes = [8, 8], strides = [1, 1]} : vector<32x8xf32> to vector<8x8xf32>
    %cst_27 = arith.constant dense<0.000000e+00> : vector<8x8xf32>
    %78 = tpu.matmul %77, %54, %cst_27 {dimension_numbers = #tpu.dot_dimension_numbers<[1], [0], [0], [1], [0, 0, 1, 1], [], []>} : vector<8x8xf32>, vector<8x8xf32>, vector<8x8xf32> -> vector<8x8xf32>
    %79 = tpu.concatenate %72, %74, %76, %78 in 1 : vector<8x8xf32>, vector<8x8xf32>, vector<8x8xf32>, vector<8x8xf32> -> vector<8x32xf32>
    %80 = arith.truncf %79 : vector<8x32xf32> to vector<8x32xbf16>
    %cst_28 = arith.constant dense<0.000000e+00> : vector<8x128xf32>
    %81 = tpu.matmul %80, %28, %cst_28 {dimension_numbers = #tpu.dot_dimension_numbers<[1], [0], [0], [1], [0, 0, 1, 1], [], []>} : vector<8x32xbf16>, vector<32x128xbf16>, vector<8x128xf32> -> vector<8x128xf32>
    %82 = vector.extract_strided_slice %81 {offsets = [0, 0], sizes = [8, 32], strides = [1, 1]} : vector<8x128xf32> to vector<8x32xf32>
    %c3 = arith.constant 3 : index
    %c0_29 = arith.constant 0 : index
    %83 = vector.load %arg5[%c3, %c0_29] : memref<24x128xf32, #tpu.memory_space<vmem>>, vector<1x32xf32>
    %84 = vector.broadcast %83 : vector<1x32xf32> to vector<8x32xf32>
    %85 = arith.addf %82, %84 : vector<8x32xf32>
    %86 = arith.addf %85, %24 : vector<8x32xf32>
    %c4 = arith.constant 4 : index
    %c0_30 = arith.constant 0 : index
    %87 = vector.load %arg5[%c4, %c0_30] : memref<24x128xf32, #tpu.memory_space<vmem>>, vector<1x32xf32>
    %c5 = arith.constant 5 : index
    %c0_31 = arith.constant 0 : index
    %88 = vector.load %arg5[%c5, %c0_31] : memref<24x128xf32, #tpu.memory_space<vmem>>, vector<1x32xf32>
    %cst_32 = arith.constant dense<0.000000e+00> : vector<8xf32>
    %89 = vector.multi_reduction <add>, %86, %cst_32 [1] : vector<8x32xf32> to vector<8xf32>
    %90 = vector.shape_cast %89 : vector<8xf32> to vector<8x1xf32>
    %cst_33 = arith.constant 3.200000e+01 : f32
    %91 = vector.broadcast %cst_33 : f32 to vector<8x1xf32>
    %92 = arith.divf %90, %91 : vector<8x1xf32>
    %93 = vector.broadcast %92 : vector<8x1xf32> to vector<8x32xf32>
    %94 = arith.subf %86, %93 : vector<8x32xf32>
    %95 = arith.mulf %94, %94 : vector<8x32xf32>
    %cst_34 = arith.constant dense<0.000000e+00> : vector<8xf32>
    %96 = vector.multi_reduction <add>, %95, %cst_34 [1] : vector<8x32xf32> to vector<8xf32>
    %97 = vector.shape_cast %96 : vector<8xf32> to vector<8x1xf32>
    %cst_35 = arith.constant 3.200000e+01 : f32
    %98 = vector.broadcast %cst_35 : f32 to vector<8x1xf32>
    %99 = arith.divf %97, %98 : vector<8x1xf32>
    %100 = vector.broadcast %92 : vector<8x1xf32> to vector<8x32xf32>
    %101 = arith.subf %86, %100 : vector<8x32xf32>
    %cst_36 = arith.constant 9.99999996E-13 : f32
    %102 = vector.broadcast %cst_36 : f32 to vector<8x1xf32>
    %103 = arith.addf %99, %102 : vector<8x1xf32>
    %104 = math.rsqrt %103 : vector<8x1xf32>
    %105 = vector.broadcast %104 : vector<8x1xf32> to vector<8x32xf32>
    %106 = arith.mulf %101, %105 : vector<8x32xf32>
    %107 = vector.broadcast %87 : vector<1x32xf32> to vector<8x32xf32>
    %108 = arith.mulf %106, %107 : vector<8x32xf32>
    %109 = vector.broadcast %88 : vector<1x32xf32> to vector<8x32xf32>
    %110 = arith.addf %108, %109 : vector<8x32xf32>
    %111 = arith.truncf %110 : vector<8x32xf32> to vector<8x32xbf16>
    %cst_37 = arith.constant dense<0.000000e+00> : vector<8x128xf32>
    %112 = tpu.matmul %111, %29, %cst_37 {dimension_numbers = #tpu.dot_dimension_numbers<[1], [0], [0], [1], [0, 0, 1, 1], [], []>} : vector<8x32xbf16>, vector<32x128xbf16>, vector<8x128xf32> -> vector<8x128xf32>
    %113 = vector.extract_strided_slice %112 {offsets = [0, 0], sizes = [8, 64], strides = [1, 1]} : vector<8x128xf32> to vector<8x64xf32>
    %c6 = arith.constant 6 : index
    %c0_38 = arith.constant 0 : index
    %114 = vector.load %arg5[%c6, %c0_38] : memref<24x128xf32, #tpu.memory_space<vmem>>, vector<1x64xf32>
    %115 = vector.broadcast %114 : vector<1x64xf32> to vector<8x64xf32>
    %116 = arith.addf %113, %115 : vector<8x64xf32>
    %cst_39 = arith.constant 5.000000e-01 : f32
    %117 = vector.broadcast %cst_39 : f32 to vector<8x64xf32>
    %118 = arith.mulf %117, %116 : vector<8x64xf32>
    %cst_40 = arith.constant 4.471500e-02 : f32
    %119 = vector.broadcast %cst_40 : f32 to vector<8x64xf32>
    %120 = arith.mulf %119, %116 : vector<8x64xf32>
    %121 = arith.mulf %120, %116 : vector<8x64xf32>
    %122 = arith.mulf %121, %116 : vector<8x64xf32>
    %123 = arith.addf %116, %122 : vector<8x64xf32>
    %cst_41 = arith.constant 0.797884583 : f32
    %124 = vector.broadcast %cst_41 : f32 to vector<8x64xf32>
    %125 = arith.mulf %124, %123 : vector<8x64xf32>
    %126 = math.tanh %125 : vector<8x64xf32>
    %cst_42 = arith.constant 1.000000e+00 : f32
    %127 = vector.broadcast %cst_42 : f32 to vector<8x64xf32>
    %128 = arith.addf %127, %126 : vector<8x64xf32>
    %129 = arith.mulf %118, %128 : vector<8x64xf32>
    %130 = arith.truncf %129 : vector<8x64xf32> to vector<8x64xbf16>
    %cst_43 = arith.constant dense<0.000000e+00> : vector<8x128xf32>
    %131 = tpu.matmul %130, %30, %cst_43 {dimension_numbers = #tpu.dot_dimension_numbers<[1], [0], [0], [1], [0, 0, 1, 1], [], []>} : vector<8x64xbf16>, vector<64x128xbf16>, vector<8x128xf32> -> vector<8x128xf32>
    %132 = vector.extract_strided_slice %131 {offsets = [0, 0], sizes = [8, 32], strides = [1, 1]} : vector<8x128xf32> to vector<8x32xf32>
    %c7 = arith.constant 7 : index
    %c0_44 = arith.constant 0 : index
    %133 = vector.load %arg5[%c7, %c0_44] : memref<24x128xf32, #tpu.memory_space<vmem>>, vector<1x32xf32>
    %134 = vector.broadcast %133 : vector<1x32xf32> to vector<8x32xf32>
    %135 = arith.addf %132, %134 : vector<8x32xf32>
    %136 = arith.addf %135, %110 : vector<8x32xf32>
    %c8 = arith.constant 8 : index
    %c0_45 = arith.constant 0 : index
    %137 = vector.load %arg5[%c8, %c0_45] : memref<24x128xf32, #tpu.memory_space<vmem>>, vector<1x32xf32>
    %c9 = arith.constant 9 : index
    %c0_46 = arith.constant 0 : index
    %138 = vector.load %arg5[%c9, %c0_46] : memref<24x128xf32, #tpu.memory_space<vmem>>, vector<1x32xf32>
    %cst_47 = arith.constant dense<0.000000e+00> : vector<8xf32>
    %139 = vector.multi_reduction <add>, %136, %cst_47 [1] : vector<8x32xf32> to vector<8xf32>
    %140 = vector.shape_cast %139 : vector<8xf32> to vector<8x1xf32>
    %cst_48 = arith.constant 3.200000e+01 : f32
    %141 = vector.broadcast %cst_48 : f32 to vector<8x1xf32>
    %142 = arith.divf %140, %141 : vector<8x1xf32>
    %143 = vector.broadcast %142 : vector<8x1xf32> to vector<8x32xf32>
    %144 = arith.subf %136, %143 : vector<8x32xf32>
    %145 = arith.mulf %144, %144 : vector<8x32xf32>
    %cst_49 = arith.constant dense<0.000000e+00> : vector<8xf32>
    %146 = vector.multi_reduction <add>, %145, %cst_49 [1] : vector<8x32xf32> to vector<8xf32>
    %147 = vector.shape_cast %146 : vector<8xf32> to vector<8x1xf32>
    %cst_50 = arith.constant 3.200000e+01 : f32
    %148 = vector.broadcast %cst_50 : f32 to vector<8x1xf32>
    %149 = arith.divf %147, %148 : vector<8x1xf32>
    %150 = vector.broadcast %142 : vector<8x1xf32> to vector<8x32xf32>
    %151 = arith.subf %136, %150 : vector<8x32xf32>
    %cst_51 = arith.constant 9.99999996E-13 : f32
    %152 = vector.broadcast %cst_51 : f32 to vector<8x1xf32>
    %153 = arith.addf %149, %152 : vector<8x1xf32>
    %154 = math.rsqrt %153 : vector<8x1xf32>
    %155 = vector.broadcast %154 : vector<8x1xf32> to vector<8x32xf32>
    %156 = arith.mulf %151, %155 : vector<8x32xf32>
    %157 = vector.broadcast %137 : vector<1x32xf32> to vector<8x32xf32>
    %158 = arith.mulf %156, %157 : vector<8x32xf32>
    %159 = vector.broadcast %138 : vector<1x32xf32> to vector<8x32xf32>
    %160 = arith.addf %158, %159 : vector<8x32xf32>
    %c160 = arith.constant 160 : index
    %c0_52 = arith.constant 0 : index
    %161 = vector.load %arg4[%c160, %c0_52] : memref<352x128xbf16, #tpu.memory_space<vmem>>, vector<32x128xbf16>
    %c192 = arith.constant 192 : index
    %c0_53 = arith.constant 0 : index
    %162 = vector.load %arg4[%c192, %c0_53] : memref<352x128xbf16, #tpu.memory_space<vmem>>, vector<32x128xbf16>
    %c224 = arith.constant 224 : index
    %c0_54 = arith.constant 0 : index
    %163 = vector.load %arg4[%c224, %c0_54] : memref<352x128xbf16, #tpu.memory_space<vmem>>, vector<32x128xbf16>
    %c256 = arith.constant 256 : index
    %c0_55 = arith.constant 0 : index
    %164 = vector.load %arg4[%c256, %c0_55] : memref<352x128xbf16, #tpu.memory_space<vmem>>, vector<64x128xbf16>
    %165 = arith.truncf %160 : vector<8x32xf32> to vector<8x32xbf16>
    %cst_56 = arith.constant dense<0.000000e+00> : vector<8x128xf32>
    %166 = tpu.matmul %165, %161, %cst_56 {dimension_numbers = #tpu.dot_dimension_numbers<[1], [0], [0], [1], [0, 0, 1, 1], [], []>} : vector<8x32xbf16>, vector<32x128xbf16>, vector<8x128xf32> -> vector<8x128xf32>
    %167 = vector.extract_strided_slice %166 {offsets = [0, 0], sizes = [8, 96], strides = [1, 1]} : vector<8x128xf32> to vector<8x96xf32>
    %c10 = arith.constant 10 : index
    %c0_57 = arith.constant 0 : index
    %168 = vector.load %arg5[%c10, %c0_57] : memref<24x128xf32, #tpu.memory_space<vmem>>, vector<1x96xf32>
    %169 = vector.broadcast %168 : vector<1x96xf32> to vector<8x96xf32>
    %170 = arith.addf %167, %169 : vector<8x96xf32>
    %171 = vector.extract_strided_slice %170 {offsets = [0, 0], sizes = [8, 8], strides = [1, 1]} : vector<8x96xf32> to vector<8x8xf32>
    %172 = vector.extract_strided_slice %170 {offsets = [0, 32], sizes = [8, 8], strides = [1, 1]} : vector<8x96xf32> to vector<8x8xf32>
    %173 = vector.extract_strided_slice %170 {offsets = [0, 64], sizes = [8, 8], strides = [1, 1]} : vector<8x96xf32> to vector<8x8xf32>
    %174 = tpu.transpose %172, [1, 0] : vector<8x8xf32> -> vector<8x8xf32>
    %cst_58 = arith.constant dense<0.000000e+00> : vector<8x8xf32>
    %175 = tpu.matmul %171, %174, %cst_58 {dimension_numbers = #tpu.dot_dimension_numbers<[1], [0], [0], [1], [0, 0, 1, 1], [], []>} : vector<8x8xf32>, vector<8x8xf32>, vector<8x8xf32> -> vector<8x8xf32>
    %176 = vector.extract_strided_slice %170 {offsets = [0, 8], sizes = [8, 8], strides = [1, 1]} : vector<8x96xf32> to vector<8x8xf32>
    %177 = vector.extract_strided_slice %170 {offsets = [0, 40], sizes = [8, 8], strides = [1, 1]} : vector<8x96xf32> to vector<8x8xf32>
    %178 = vector.extract_strided_slice %170 {offsets = [0, 72], sizes = [8, 8], strides = [1, 1]} : vector<8x96xf32> to vector<8x8xf32>
    %179 = tpu.transpose %177, [1, 0] : vector<8x8xf32> -> vector<8x8xf32>
    %cst_59 = arith.constant dense<0.000000e+00> : vector<8x8xf32>
    %180 = tpu.matmul %176, %179, %cst_59 {dimension_numbers = #tpu.dot_dimension_numbers<[1], [0], [0], [1], [0, 0, 1, 1], [], []>} : vector<8x8xf32>, vector<8x8xf32>, vector<8x8xf32> -> vector<8x8xf32>
    %181 = vector.extract_strided_slice %170 {offsets = [0, 16], sizes = [8, 8], strides = [1, 1]} : vector<8x96xf32> to vector<8x8xf32>
    %182 = vector.extract_strided_slice %170 {offsets = [0, 48], sizes = [8, 8], strides = [1, 1]} : vector<8x96xf32> to vector<8x8xf32>
    %183 = vector.extract_strided_slice %170 {offsets = [0, 80], sizes = [8, 8], strides = [1, 1]} : vector<8x96xf32> to vector<8x8xf32>
    %184 = tpu.transpose %182, [1, 0] : vector<8x8xf32> -> vector<8x8xf32>
    %cst_60 = arith.constant dense<0.000000e+00> : vector<8x8xf32>
    %185 = tpu.matmul %181, %184, %cst_60 {dimension_numbers = #tpu.dot_dimension_numbers<[1], [0], [0], [1], [0, 0, 1, 1], [], []>} : vector<8x8xf32>, vector<8x8xf32>, vector<8x8xf32> -> vector<8x8xf32>
    %186 = vector.extract_strided_slice %170 {offsets = [0, 24], sizes = [8, 8], strides = [1, 1]} : vector<8x96xf32> to vector<8x8xf32>
    %187 = vector.extract_strided_slice %170 {offsets = [0, 56], sizes = [8, 8], strides = [1, 1]} : vector<8x96xf32> to vector<8x8xf32>
    %188 = vector.extract_strided_slice %170 {offsets = [0, 88], sizes = [8, 8], strides = [1, 1]} : vector<8x96xf32> to vector<8x8xf32>
    %189 = tpu.transpose %187, [1, 0] : vector<8x8xf32> -> vector<8x8xf32>
    %cst_61 = arith.constant dense<0.000000e+00> : vector<8x8xf32>
    %190 = tpu.matmul %186, %189, %cst_61 {dimension_numbers = #tpu.dot_dimension_numbers<[1], [0], [0], [1], [0, 0, 1, 1], [], []>} : vector<8x8xf32>, vector<8x8xf32>, vector<8x8xf32> -> vector<8x8xf32>
    %191 = tpu.concatenate %175, %180, %185, %190 in 0 : vector<8x8xf32>, vector<8x8xf32>, vector<8x8xf32>, vector<8x8xf32> -> vector<32x8xf32>
    %cst_62 = arith.constant 0.353553385 : f32
    %192 = vector.broadcast %cst_62 : f32 to vector<32x8xf32>
    %193 = arith.mulf %191, %192 : vector<32x8xf32>
    %194 = arith.addf %193, %26 : vector<32x8xf32>
    %cst_63 = arith.constant dense<0xFF800000> : vector<32xf32>
    %195 = vector.multi_reduction <maximumf>, %194, %cst_63 [1] : vector<32x8xf32> to vector<32xf32>
    %196 = vector.shape_cast %195 : vector<32xf32> to vector<32x1xf32>
    %197 = vector.broadcast %196 : vector<32x1xf32> to vector<32x8xf32>
    %198 = arith.subf %194, %197 : vector<32x8xf32>
    %199 = math.exp %198 : vector<32x8xf32>
    %cst_64 = arith.constant dense<0.000000e+00> : vector<32xf32>
    %200 = vector.multi_reduction <add>, %199, %cst_64 [1] : vector<32x8xf32> to vector<32xf32>
    %201 = vector.shape_cast %200 : vector<32xf32> to vector<32x1xf32>
    %202 = tpu.reciprocal %201 {approx = true} : vector<32x1xf32> -> vector<32x1xf32>
    %203 = vector.broadcast %202 : vector<32x1xf32> to vector<32x8xf32>
    %204 = arith.mulf %199, %203 : vector<32x8xf32>
    %205 = vector.extract_strided_slice %204 {offsets = [0, 0], sizes = [8, 8], strides = [1, 1]} : vector<32x8xf32> to vector<8x8xf32>
    %cst_65 = arith.constant dense<0.000000e+00> : vector<8x8xf32>
    %206 = tpu.matmul %205, %173, %cst_65 {dimension_numbers = #tpu.dot_dimension_numbers<[1], [0], [0], [1], [0, 0, 1, 1], [], []>} : vector<8x8xf32>, vector<8x8xf32>, vector<8x8xf32> -> vector<8x8xf32>
    %207 = vector.extract_strided_slice %204 {offsets = [8, 0], sizes = [8, 8], strides = [1, 1]} : vector<32x8xf32> to vector<8x8xf32>
    %cst_66 = arith.constant dense<0.000000e+00> : vector<8x8xf32>
    %208 = tpu.matmul %207, %178, %cst_66 {dimension_numbers = #tpu.dot_dimension_numbers<[1], [0], [0], [1], [0, 0, 1, 1], [], []>} : vector<8x8xf32>, vector<8x8xf32>, vector<8x8xf32> -> vector<8x8xf32>
    %209 = vector.extract_strided_slice %204 {offsets = [16, 0], sizes = [8, 8], strides = [1, 1]} : vector<32x8xf32> to vector<8x8xf32>
    %cst_67 = arith.constant dense<0.000000e+00> : vector<8x8xf32>
    %210 = tpu.matmul %209, %183, %cst_67 {dimension_numbers = #tpu.dot_dimension_numbers<[1], [0], [0], [1], [0, 0, 1, 1], [], []>} : vector<8x8xf32>, vector<8x8xf32>, vector<8x8xf32> -> vector<8x8xf32>
    %211 = vector.extract_strided_slice %204 {offsets = [24, 0], sizes = [8, 8], strides = [1, 1]} : vector<32x8xf32> to vector<8x8xf32>
    %cst_68 = arith.constant dense<0.000000e+00> : vector<8x8xf32>
    %212 = tpu.matmul %211, %188, %cst_68 {dimension_numbers = #tpu.dot_dimension_numbers<[1], [0], [0], [1], [0, 0, 1, 1], [], []>} : vector<8x8xf32>, vector<8x8xf32>, vector<8x8xf32> -> vector<8x8xf32>
    %213 = tpu.concatenate %206, %208, %210, %212 in 1 : vector<8x8xf32>, vector<8x8xf32>, vector<8x8xf32>, vector<8x8xf32> -> vector<8x32xf32>
    %214 = arith.truncf %213 : vector<8x32xf32> to vector<8x32xbf16>
    %cst_69 = arith.constant dense<0.000000e+00> : vector<8x128xf32>
    %215 = tpu.matmul %214, %162, %cst_69 {dimension_numbers = #tpu.dot_dimension_numbers<[1], [0], [0], [1], [0, 0, 1, 1], [], []>} : vector<8x32xbf16>, vector<32x128xbf16>, vector<8x128xf32> -> vector<8x128xf32>
    %216 = vector.extract_strided_slice %215 {offsets = [0, 0], sizes = [8, 32], strides = [1, 1]} : vector<8x128xf32> to vector<8x32xf32>
    %c11 = arith.constant 11 : index
    %c0_70 = arith.constant 0 : index
    %217 = vector.load %arg5[%c11, %c0_70] : memref<24x128xf32, #tpu.memory_space<vmem>>, vector<1x32xf32>
    %218 = vector.broadcast %217 : vector<1x32xf32> to vector<8x32xf32>
    %219 = arith.addf %216, %218 : vector<8x32xf32>
    %220 = arith.addf %219, %160 : vector<8x32xf32>
    %c12 = arith.constant 12 : index
    %c0_71 = arith.constant 0 : index
    %221 = vector.load %arg5[%c12, %c0_71] : memref<24x128xf32, #tpu.memory_space<vmem>>, vector<1x32xf32>
    %c13 = arith.constant 13 : index
    %c0_72 = arith.constant 0 : index
    %222 = vector.load %arg5[%c13, %c0_72] : memref<24x128xf32, #tpu.memory_space<vmem>>, vector<1x32xf32>
    %cst_73 = arith.constant dense<0.000000e+00> : vector<8xf32>
    %223 = vector.multi_reduction <add>, %220, %cst_73 [1] : vector<8x32xf32> to vector<8xf32>
    %224 = vector.shape_cast %223 : vector<8xf32> to vector<8x1xf32>
    %cst_74 = arith.constant 3.200000e+01 : f32
    %225 = vector.broadcast %cst_74 : f32 to vector<8x1xf32>
    %226 = arith.divf %224, %225 : vector<8x1xf32>
    %227 = vector.broadcast %226 : vector<8x1xf32> to vector<8x32xf32>
    %228 = arith.subf %220, %227 : vector<8x32xf32>
    %229 = arith.mulf %228, %228 : vector<8x32xf32>
    %cst_75 = arith.constant dense<0.000000e+00> : vector<8xf32>
    %230 = vector.multi_reduction <add>, %229, %cst_75 [1] : vector<8x32xf32> to vector<8xf32>
    %231 = vector.shape_cast %230 : vector<8xf32> to vector<8x1xf32>
    %cst_76 = arith.constant 3.200000e+01 : f32
    %232 = vector.broadcast %cst_76 : f32 to vector<8x1xf32>
    %233 = arith.divf %231, %232 : vector<8x1xf32>
    %234 = vector.broadcast %226 : vector<8x1xf32> to vector<8x32xf32>
    %235 = arith.subf %220, %234 : vector<8x32xf32>
    %cst_77 = arith.constant 9.99999996E-13 : f32
    %236 = vector.broadcast %cst_77 : f32 to vector<8x1xf32>
    %237 = arith.addf %233, %236 : vector<8x1xf32>
    %238 = math.rsqrt %237 : vector<8x1xf32>
    %239 = vector.broadcast %238 : vector<8x1xf32> to vector<8x32xf32>
    %240 = arith.mulf %235, %239 : vector<8x32xf32>
    %241 = vector.broadcast %221 : vector<1x32xf32> to vector<8x32xf32>
    %242 = arith.mulf %240, %241 : vector<8x32xf32>
    %243 = vector.broadcast %222 : vector<1x32xf32> to vector<8x32xf32>
    %244 = arith.addf %242, %243 : vector<8x32xf32>
    %245 = arith.truncf %244 : vector<8x32xf32> to vector<8x32xbf16>
    %cst_78 = arith.constant dense<0.000000e+00> : vector<8x128xf32>
    %246 = tpu.matmul %245, %163, %cst_78 {dimension_numbers = #tpu.dot_dimension_numbers<[1], [0], [0], [1], [0, 0, 1, 1], [], []>} : vector<8x32xbf16>, vector<32x128xbf16>, vector<8x128xf32> -> vector<8x128xf32>
    %247 = vector.extract_strided_slice %246 {offsets = [0, 0], sizes = [8, 64], strides = [1, 1]} : vector<8x128xf32> to vector<8x64xf32>
    %c14 = arith.constant 14 : index
    %c0_79 = arith.constant 0 : index
    %248 = vector.load %arg5[%c14, %c0_79] : memref<24x128xf32, #tpu.memory_space<vmem>>, vector<1x64xf32>
    %249 = vector.broadcast %248 : vector<1x64xf32> to vector<8x64xf32>
    %250 = arith.addf %247, %249 : vector<8x64xf32>
    %cst_80 = arith.constant 5.000000e-01 : f32
    %251 = vector.broadcast %cst_80 : f32 to vector<8x64xf32>
    %252 = arith.mulf %251, %250 : vector<8x64xf32>
    %cst_81 = arith.constant 4.471500e-02 : f32
    %253 = vector.broadcast %cst_81 : f32 to vector<8x64xf32>
    %254 = arith.mulf %253, %250 : vector<8x64xf32>
    %255 = arith.mulf %254, %250 : vector<8x64xf32>
    %256 = arith.mulf %255, %250 : vector<8x64xf32>
    %257 = arith.addf %250, %256 : vector<8x64xf32>
    %cst_82 = arith.constant 0.797884583 : f32
    %258 = vector.broadcast %cst_82 : f32 to vector<8x64xf32>
    %259 = arith.mulf %258, %257 : vector<8x64xf32>
    %260 = math.tanh %259 : vector<8x64xf32>
    %cst_83 = arith.constant 1.000000e+00 : f32
    %261 = vector.broadcast %cst_83 : f32 to vector<8x64xf32>
    %262 = arith.addf %261, %260 : vector<8x64xf32>
    %263 = arith.mulf %252, %262 : vector<8x64xf32>
    %264 = arith.truncf %263 : vector<8x64xf32> to vector<8x64xbf16>
    %cst_84 = arith.constant dense<0.000000e+00> : vector<8x128xf32>
    %265 = tpu.matmul %264, %164, %cst_84 {dimension_numbers = #tpu.dot_dimension_numbers<[1], [0], [0], [1], [0, 0, 1, 1], [], []>} : vector<8x64xbf16>, vector<64x128xbf16>, vector<8x128xf32> -> vector<8x128xf32>
    %266 = vector.extract_strided_slice %265 {offsets = [0, 0], sizes = [8, 32], strides = [1, 1]} : vector<8x128xf32> to vector<8x32xf32>
    %c15 = arith.constant 15 : index
    %c0_85 = arith.constant 0 : index
    %267 = vector.load %arg5[%c15, %c0_85] : memref<24x128xf32, #tpu.memory_space<vmem>>, vector<1x32xf32>
    %268 = vector.broadcast %267 : vector<1x32xf32> to vector<8x32xf32>
    %269 = arith.addf %266, %268 : vector<8x32xf32>
    %270 = arith.addf %269, %244 : vector<8x32xf32>
    %c16 = arith.constant 16 : index
    %c0_86 = arith.constant 0 : index
    %271 = vector.load %arg5[%c16, %c0_86] : memref<24x128xf32, #tpu.memory_space<vmem>>, vector<1x32xf32>
    %c17 = arith.constant 17 : index
    %c0_87 = arith.constant 0 : index
    %272 = vector.load %arg5[%c17, %c0_87] : memref<24x128xf32, #tpu.memory_space<vmem>>, vector<1x32xf32>
    %cst_88 = arith.constant dense<0.000000e+00> : vector<8xf32>
    %273 = vector.multi_reduction <add>, %270, %cst_88 [1] : vector<8x32xf32> to vector<8xf32>
    %274 = vector.shape_cast %273 : vector<8xf32> to vector<8x1xf32>
    %cst_89 = arith.constant 3.200000e+01 : f32
    %275 = vector.broadcast %cst_89 : f32 to vector<8x1xf32>
    %276 = arith.divf %274, %275 : vector<8x1xf32>
    %277 = vector.broadcast %276 : vector<8x1xf32> to vector<8x32xf32>
    %278 = arith.subf %270, %277 : vector<8x32xf32>
    %279 = arith.mulf %278, %278 : vector<8x32xf32>
    %cst_90 = arith.constant dense<0.000000e+00> : vector<8xf32>
    %280 = vector.multi_reduction <add>, %279, %cst_90 [1] : vector<8x32xf32> to vector<8xf32>
    %281 = vector.shape_cast %280 : vector<8xf32> to vector<8x1xf32>
    %cst_91 = arith.constant 3.200000e+01 : f32
    %282 = vector.broadcast %cst_91 : f32 to vector<8x1xf32>
    %283 = arith.divf %281, %282 : vector<8x1xf32>
    %284 = vector.broadcast %276 : vector<8x1xf32> to vector<8x32xf32>
    %285 = arith.subf %270, %284 : vector<8x32xf32>
    %cst_92 = arith.constant 9.99999996E-13 : f32
    %286 = vector.broadcast %cst_92 : f32 to vector<8x1xf32>
    %287 = arith.addf %283, %286 : vector<8x1xf32>
    %288 = math.rsqrt %287 : vector<8x1xf32>
    %289 = vector.broadcast %288 : vector<8x1xf32> to vector<8x32xf32>
    %290 = arith.mulf %285, %289 : vector<8x32xf32>
    %291 = vector.broadcast %271 : vector<1x32xf32> to vector<8x32xf32>
    %292 = arith.mulf %290, %291 : vector<8x32xf32>
    %293 = vector.broadcast %272 : vector<1x32xf32> to vector<8x32xf32>
    %294 = arith.addf %292, %293 : vector<8x32xf32>
    %c320 = arith.constant 320 : index
    %c0_93 = arith.constant 0 : index
    %295 = vector.load %arg4[%c320, %c0_93] : memref<352x128xbf16, #tpu.memory_space<vmem>>, vector<32x128xbf16>
    %c18 = arith.constant 18 : index
    %c0_94 = arith.constant 0 : index
    %296 = vector.load %arg5[%c18, %c0_94] : memref<24x128xf32, #tpu.memory_space<vmem>>, vector<1x128xf32>
    %297 = arith.truncf %294 : vector<8x32xf32> to vector<8x32xbf16>
    %cst_95 = arith.constant dense<0.000000e+00> : vector<8x128xf32>
    %298 = tpu.matmul %297, %295, %cst_95 {dimension_numbers = #tpu.dot_dimension_numbers<[1], [0], [0], [1], [0, 0, 1, 1], [], []>} : vector<8x32xbf16>, vector<32x128xbf16>, vector<8x128xf32> -> vector<8x128xf32>
    %299 = vector.broadcast %296 : vector<1x128xf32> to vector<8x128xf32>
    %300 = arith.addf %298, %299 : vector<8x128xf32>
    %c0_96 = arith.constant 0 : index
    %c0_97 = arith.constant 0 : index
    %301 = vector.load %arg6[%c0_96, %c0_97] : memref<8x128xf32, #tpu.memory_space<vmem>>, vector<8x128xf32>
    tpu.vector_store %arg6[%c0_96, %c0_97], %300 {strides = array<i32>} : memref<8x128xf32, #tpu.memory_space<vmem>>, vector<8x128xf32>,
    %c0_98 = arith.constant 0 : index
    %c0_99 = arith.constant 0 : index
    %302 = vector.load %arg3[%c0_98, %c0_99] : memref<8x1xi32, #tpu.memory_space<vmem>>, vector<8x1xi32>
    %cst_100 = arith.constant dense<0xFF800000> : vector<8xf32>
    %303 = vector.multi_reduction <maximumf>, %300, %cst_100 [1] : vector<8x128xf32> to vector<8xf32>
    %304 = vector.shape_cast %303 : vector<8xf32> to vector<8x1xf32>
    %305 = vector.broadcast %304 : vector<8x1xf32> to vector<8x128xf32>
    %306 = arith.subf %300, %305 : vector<8x128xf32>
    %307 = math.exp %306 : vector<8x128xf32>
    %cst_101 = arith.constant dense<0.000000e+00> : vector<8xf32>
    %308 = vector.multi_reduction <add>, %307, %cst_101 [1] : vector<8x128xf32> to vector<8xf32>
    %309 = vector.shape_cast %308 : vector<8xf32> to vector<8x1xf32>
    %310 = math.log %309 : vector<8x1xf32>
    %311 = arith.addf %310, %304 : vector<8x1xf32>
    %312 = tpu.iota {dimensions = array<i32: 1>} : vector<8x128xi32>
    %313 = vector.broadcast %302 : vector<8x1xi32> to vector<8x128xi32>
    %314 = arith.cmpi eq, %312, %313 : vector<8x128xi32>
    %cst_102 = arith.constant 0.000000e+00 : f32
    %315 = vector.broadcast %cst_102 : f32 to vector<8x128xf32>
    %316 = arith.select %314, %300, %315 : vector<8x128xi1>, vector<8x128xf32>
    %cst_103 = arith.constant dense<0.000000e+00> : vector<8xf32>
    %317 = vector.multi_reduction <add>, %316, %cst_103 [1] : vector<8x128xf32> to vector<8xf32>
    %318 = vector.shape_cast %317 : vector<8xf32> to vector<8x1xf32>
    %319 = arith.subf %311, %318 : vector<8x1xf32>
    %c0_i32 = arith.constant 0 : i32
    %320 = vector.broadcast %c0_i32 : i32 to vector<8x1xi32>
    %321 = arith.cmpi ne, %302, %320 : vector<8x1xi32>
    %322 = arith.extui %321 : vector<8x1xi1> to vector<8x1xi32>
    %323 = arith.sitofp %322 : vector<8x1xi32> to vector<8x1xf32>
    %c0_i32_104 = arith.constant 0 : i32
    %324 = vector.broadcast %c0_i32_104 : i32 to vector<8x128xi32>
    %325 = arith.cmpi eq, %312, %324 : vector<8x128xi32>
    %326 = arith.mulf %319, %323 : vector<8x1xf32>
    %c1_i32 = arith.constant 1 : i32
    %327 = vector.broadcast %c1_i32 : i32 to vector<8x128xi32>
    %328 = arith.cmpi eq, %312, %327 : vector<8x128xi32>
    %cst_105 = arith.constant 0.000000e+00 : f32
    %329 = vector.shape_cast %323 : vector<8x1xf32> to vector<8x1xf32>
    %330 = vector.broadcast %329 : vector<8x1xf32> to vector<8x128xf32>
    %331 = vector.broadcast %cst_105 : f32 to vector<8x128xf32>
    %332 = arith.select %328, %330, %331 : vector<8x128xi1>, vector<8x128xf32>
    %333 = vector.shape_cast %326 : vector<8x1xf32> to vector<8x1xf32>
    %334 = vector.broadcast %333 : vector<8x1xf32> to vector<8x128xf32>
    %335 = arith.select %325, %334, %332 : vector<8x128xi1>, vector<8x128xf32>
    %c0_106 = arith.constant 0 : index
    %c0_107 = arith.constant 0 : index
    %336 = vector.load %arg7[%c0_106, %c0_107] : memref<8x128xf32, #tpu.memory_space<vmem>>, vector<8x128xf32>
    tpu.vector_store %arg7[%c0_106, %c0_107], %335 {strides = array<i32>} : memref<8x128xf32, #tpu.memory_space<vmem>>, vector<8x128xf32>,
    return
  }
  func.func @transform_0(%arg0: i32) -> (i32, i32) {
    %c0_i32 = arith.constant 0 : i32
    %c0_i32_0 = arith.constant 0 : i32
    return %arg0, %c0_i32 : i32, i32
  }
  func.func @transform_1(%arg0: i32) -> (i32, i32) {
    %c0_i32 = arith.constant 0 : i32
    %c0_i32_0 = arith.constant 0 : i32
    return %arg0, %c0_i32 : i32, i32
  }
  func.func @transform_2(%arg0: i32) -> (i32, i32) {
    %c0_i32 = arith.constant 0 : i32
    %c0_i32_0 = arith.constant 0 : i32
    return %arg0, %c0_i32 : i32, i32
  }
  func.func @transform_3(%arg0: i32) -> (i32, i32) {
    %c0_i32 = arith.constant 0 : i32
    %c0_i32_0 = arith.constant 0 : i32
    %c0_i32_1 = arith.constant 0 : i32
    return %c0_i32, %c0_i32_0 : i32, i32
  }
  func.func @transform_4(%arg0: i32) -> (i32, i32) {
    %c0_i32 = arith.constant 0 : i32
    %c0_i32_0 = arith.constant 0 : i32
    %c0_i32_1 = arith.constant 0 : i32
    return %c0_i32, %c0_i32_0 : i32, i32
  }
  func.func @transform_5(%arg0: i32) -> (i32, i32) {
    %c0_i32 = arith.constant 0 : i32
    %c0_i32_0 = arith.constant 0 : i32
    return %arg0, %c0_i32 : i32, i32
  }
  func.func @transform_6(%arg0: i32) -> (i32, i32) {
    %c0_i32 = arith.constant 0 : i32
    %c0_i32_0 = arith.constant 0 : i32
    return %arg0, %c0_i32 : i32, i32
  }
}

</mosaic_0001>

<bundles_post_ra>
// kernel: tpu_custom_call.1
= control target key start
LH: loop header
LB: loop body
LE: loop exit
PB: predicated region body
PF: predicated region fallthrough
CT: control target
= control target key end

     0   :  { %12 = vsyncpa [#allocation3], 0  ;;  %s3741_s0 = inlined_call_operand.vmem [shape: f32[16,32], index: 0, kind: input, shape index: {}]   ;;  %s3742_s1 = inlined_call_operand.vmem [shape: f32[16,8], index: 1, kind: input, shape index: {}]   ;;  %s3743_s2 = inlined_call_operand.vmem [shape: s32[16,1], index: 2, kind: input, shape index: {}]   ;;  %s3744_s3 = inlined_call_operand.hbm [shape: bf16[352,128], index: 3, kind: input, shape index: {}]   ;;  %s3745_s4 = inlined_call_operand.vmem [shape: f32[24,128], index: 4, kind: input, shape index: {}]   ;;  %s3746_s5 = inlined_call_operand.hbm [shape: f32[16,128], index: 5, kind: output, shape index: {0}]   ;;  %s3747_s6 = inlined_call_operand.hbm [shape: f32[16,128], index: 6, kind: output, shape index: {1}]  }
   0x1   :  { %13 = vsyncpa [#allocation4], 0 }
   0x2   :  { %15 = vsyncpa [#allocation4 + $0x1], 0 }
   0x3   :  { %16 = vsyncpa [#allocation7], 0 }
   0x4   :  { %18 = vsyncpa [#allocation7 + $0x1], 0  ;;  %s3294_s21 = smov 0   ;;  %s3296_s22 = smov 0  }
   0x5   :  { %s3298_s23 = smov 0   ;;  %s3300_s24 = smov 0  }
   0x6 LB: > { %s3315_s25 = sadd.s32 4294967295, %s3235_s24   ;;  %s2652_s26 = sadd.s32 4294967294, %s3235_s24   ;;  %s3235_s24 = sphi %s3300_s24, %s3767_s24   ;;  %s3231_s23 = sphi %s3298_s23, %s3766_s23   ;;  %s3227_s22 = sphi %s3296_s22, %s3765_s22   ;;  %s3223_s21 = sphi %s3294_s21, %s3764_s21  }
   0x7   : > { %s3319_s27 = sadd.s32 1, %s3235_s24   ;;  %s151_s28 = sadd.s32 1, %s3231_s23 }
   0x8   : > { %s148_s29 = ssub.s32 %s3235_s24, %s3319_s27  ;;  %p161_p0 = scmp.ne.s32.totalorder %s3231_s23, %s3227_s22 }
   0x9   : > { %p149_p1 = scmp.eq.s32.totalorder %s148_s29, 0  ;;  %p162_p2 = scmp.eq.s32.totalorder %s3315_s25, 1 }
   0xa   : > { %p167_p3 = scmp.ne.s32.totalorder %s3227_s22, %s3223_s21  ;;  %p168_p4 = scmp.eq.s32.totalorder %s2652_s26, 1 }
   0xb   : > { %s3330_s30 = scalar_select %p149_p1, %s3231_s23, %s151_s28  }
   0xc   : > { %p3332_p5 = por %p162_p2, %p161_p0  ;;  %p3336_p6 = por %p168_p4, %p167_p3 }
   0xd   : > { %p2653_p7 = scmp.ge.s32.totalorder %s3235_s24, 1  ;;  %p201_p8 = scmp.lt.s32.totalorder %s3235_s24, 3 }
   0xe   : > { %s3755_s8 = scalar_select %p3336_p6, 1, 0 }
   0xf   : > { %p2986_p9 = scmp.eq.s32.totalorder %s3315_s25, 0  ;;  %p3343_p10 = pnand %p2653_p7, %p201_p8 }
  0x10   : > { %s3237_s10 = smov [#allocation2]  }
  0x11   : > { %s213_s11 = sshll.u32 %s3237_s10, 4  ;;  %p2975_p11 = pneg %p3343_p10  ;;  %s214_s11 = int_to_ptr.vmem [resolvable:$true] %s213_s11 }
  0x12   : > { %s3126_s12 = scalar_lea.vmem %s214_s11, 2816  ;;  %p3134_p3 = scmp.lt.s32.totalorder %s214_s11, %s214_s11 }
  0x13   : > { %p2976_p12 = pnand %p2986_p9, %p2975_p11  ;;  %p3127_p0 = scmp.ne.s32.totalorder %s214_s11, %s3126_s12 }
  0x14   : > { %p3135_p4 = scmp.lt.s32.totalorder %s3126_s12, %s3126_s12 }
  0x15   : > { %p3117_p13 = pneg %p2976_p12 }
  0x16   : > { %p3136_p6 = por %p3135_p4, %p3134_p3 }
  0x17   : > { %p3129_p1 = pnand %p3127_p0, %p3117_p13 }
  0x19   : > { %p3130_p2 = pneg %p3129_p1 }
  0x1b   : > { %p3137_p7 = pnand %p3136_p6, %p3130_p2 }
  0x1d   : > { %3140 = shalt.err (!%p3137_p7)
}
  0x1e   : > { %s3238_s13 = smov 64   ;;  %s3239_s14 = smov 4  }
  0x1f   : > { %2978 = dma.hbm_to_vmem [thread:$0]  (!%p2976_p12), %s3744_s3, 2816, %s214_s11, [#allocation3], %s3238_s13, %s3238_s13, %s3239_s14  }
  0x20   : > { %253 = sbr.rel (%p3343_p10) target bundleno = 5811 (0x16b3), region = 40 }
  0x25   : > { %3210 = dma.done.wait (%p2986_p9), [#allocation3], 2816  }
  0x26   : > { %3212 = vsyncadd (%p2986_p9), [#allocation3], 4294964480  ;;  %p295_p8 = scmp.lt.s32.totalorder %s3315_s25, 1  ;;  %vm311_vm0 = vcmask 261120   ;;  %v3043_v7 = vld [vmem:[#allocation2 + $0x8] sm:$0xff]   ;;  %v3240_v8 = vmov 0.0  }
  0x27   : > { %2807 = vmatprep.subr.bf16.mxu0 %v3240_v8  ;;  %vm3241_vm1 = vmmov 0   ;;  %v3044_v9 = vld [vmem:[#allocation2] sm:$0xff]   ;;  %2815 = vmatprep.subr.mxu1 %v3240_v8  ;;  %s3242_s13 = smov 120   ;;  %s3243_s14 = smov 96   ;;  %vm422_vm2 = vcmask 64512   ;;  %vm1100_vm3 = vcmask 130048  }
  0x28   : > { %s296_s17 = scalar_select %p295_p8, %s3315_s25, 1  ;;  %2811 = vmatprep.mubr.msk.bf16.mxu0 %vm3241_vm1, %v3240_v8  ;;  %2808 = vmatpush3.bf16.msra.mxu0 %v3043_v7  ;;  %v2663_v14 = vld [vmem:[%s3745_s4] ss:$0 sm:$0xff]  ;;  %v2664_v16 = vld [vmem:[%s3745_s4 + $0x1] ss:$0 sm:$0xff]  ;;  %vm1102_vm4 = vcmask 195584  }
  0x29   : > { %2809 = vmatprep.subr.bf16.mxu0 %v3240_v8  ;;  %2817 = vmatprep.mubr.msk.f32.mxu1 %vm3241_vm1, %v3240_v8  ;;  %v2668_v20 = vld [vmem:[%s3745_s4 + $0x2] ss:$0 sm:$0xff]  ;;  %s3244_s15 = smov 88   ;;  %s3245_s16 = smov 80   ;;  %vm1288_vm5 = vcmask 523264  }
  0x2a   : > { %s3362_s18 = sshll.u32 %s296_s17, 3  ;;  %s3246_s17 = smov 72  }
  0x2b   : > { %s298_s26 = scalar_lea.vmem %s3741_s0, %s3362_s18  ;;  %s3247_s19 = smov 112  }
  0x2c   : > { %v308_v0 = vld [vmem:[%s298_s26] sm:$0xff]  ;;  %2810 = vmatpush3.bf16.msra.mxu0 %v3044_v9  ;;  %s3248_s20 = smov 104   ;;  %s302_s29 = scalar_lea.vmem %s3742_s1, %s3362_s18 }
  0x2d   : > { %v312_v1 = vsel %vm311_vm0, %v308_v0, 0.0  ;;  %2830 = vmatprep.subr.mxu0 %v3240_v8  ;;  %v3435_v33 = vld [vmem:[%s302_s29] sm:$0xff]  ;;  %s3249_s9 = smov 64   ;;  %s3753_s10 = smov 48  }
  0x2e   : > { %313 = vadd.xlane.f32.xlu0 %v312_v1  ;;  %s3751_s11 = smov 56   ;;  %s3752_s12 = smov 40  }
  0x2f   : > { %s3750_s26 = smov 8   ;;  %s3748_s28 = smov 24  }
  0x30   : > { %s3749_s29 = smov 16  }
  0xb7   : > { %v314_v2 = vpop.xlane.xlu0 %313 }
  0xb8   : > { %v316_v3 = vmul.f32 0.03125, %v314_v2 }
  0xba   : > { %v317_v4 = vsub.f32 %v308_v0, %v316_v3 }
  0xbc   : > { %v318_v5 = vmul.f32 %v317_v4, %v317_v4 }
  0xbe   : > { %v319_v6 = vsel %vm311_vm0, %v318_v5, 0.0 }
  0xbf   : > { %320 = vadd.xlane.f32.xlu0 %v319_v6 }
 0x148   : > { %v321_v10 = vpop.xlane.xlu0 %320 }
 0x149   : > { %v322_v11 = vmul.f32 0.03125, %v321_v10 }
 0x14b   : > { %v323_v12 = vadd.f32 1e-12, %v322_v11 }
 0x14d   : > { %3065 = vrsqrt.f32 %v323_v12 }
 0x15a   : > { %v3066_v13 = vpop.eup %3065 }
 0x15b   : > { %v325_v15 = vmul.f32 %v3066_v13, %v317_v4 }
 0x15d   : > { %v330_v17 = vmul.f32 %v2663_v14, %v325_v15 }
 0x15f   : > { %v3384_v18 = vadd.f32 %v2664_v16, %v330_v17 }
 0x161   : > { %v357_v19 = vpack.c.bf16 %v3384_v18, %v3384_v18 }
 0x163   : > { %2812 = vmatmul.mubr.msk.bf16.vlgmr.msra.gmra.mxu0 %vm311_vm0, %v357_v19 }
 0x164   : > { %2832 = vmatprep.mubr.msk.f32.mxu0 %vm3241_vm1, %v3240_v8 }
 0x223   : > { %v407_v21 = vpop.f32.mrf.mxu0 }
 0x224   : > { %v3394_v22 = vadd.f32 %v2668_v20, %v407_v21 }
 0x225   : > { %v2813_v23 = vpop.f32.mrf.mxu0 }
 0x226   : > { %497 = vrot.lane.b32.xlu0 %v3394_v22, %s3242_s13  ;;  %420 = vrot.lane.b32.xlu1 %v3394_v22, %s3243_s14 }
 0x227   : > { %v410_v24 = vpop.f32.mrf.mxu0 }
 0x229   : > { %v2814_v25 = vpop.f32.mrf.mxu0 }
 0x22a   : > { %499 = vrot.lane.b32.xlu1 %v3394_v22, %s3244_s15 }
 0x22e   : > { %577 = vrot.lane.b32.xlu1 %v3394_v22, %s3245_s16 }
 0x232   : > { %655 = vrot.lane.b32.xlu1 %v3394_v22, %s3246_s17 }
 0x236   : > { %575 = vrot.lane.b32.xlu1 %v3394_v22, %s3247_s19 }
 0x23a   : > { %653 = vrot.lane.b32.xlu1 %v3394_v22, %s3248_s20 }
 0x298   : > { %v421_v26 = vpop.permute.xlu1 %420  ;;  %v498_v28 = vpop.permute.xlu0 %497 }
 0x299   : > { %2816 = vmatpush3.xpose.msk.msra.mxu1 %vm422_vm2, %v421_v26 }
 0x29a   : > { %2820 = vmatprep.subr.mxu1 %v3240_v8 }
 0x29c   : > { %2818 = vmatmul.mubr.msk.f32.vlgmr.msra.gmra.mxu1 %vm422_vm2, %v3394_v22  ;;  %v500_v27 = vpop.permute.xlu1 %499 }
 0x29d   : > { %2821 = vmatpush3.xpose.msk.msra.mxu1 %vm422_vm2, %v500_v27  ;;  %2822 = vmatprep.mubr.msk.f32.mxu1 %vm3241_vm1, %v3240_v8 }
 0x29e   : > { %2825 = vmatprep.subr.mxu1 %v3240_v8 }
 0x2a0   : > { %2823 = vmatmul.mubr.msk.f32.vlgmr.msra.gmra.mxu1 %vm422_vm2, %v498_v28  ;;  %v578_v29 = vpop.permute.xlu1 %577 }
 0x2a1   : > { %2826 = vmatpush3.xpose.msk.msra.mxu1 %vm422_vm2, %v578_v29  ;;  %2827 = vmatprep.mubr.msk.f32.mxu1 %vm3241_vm1, %v3240_v8 }
 0x2a2   : > { %2835 = vmatprep.subr.mxu1 %v3240_v8 }
 0x2a4   : > { %v656_v30 = vpop.permute.xlu1 %655 }
 0x2a5   : > { %2831 = vmatpush3.xpose.msk.msra.mxu0 %vm422_vm2, %v656_v30 }
 0x2a6   : > { %2840 = vmatprep.subr.mxu0 %v3240_v8 }
 0x2a8   : > { %v576_v31 = vpop.permute.xlu1 %575 }
 0x2a9   : > { %2828 = vmatmul.mubr.msk.f32.vlgmr.msra.gmra.mxu1 %vm422_vm2, %v576_v31 }
 0x2aa   : > { %2837 = vmatprep.mubr.msk.f32.mxu1 %vm3241_vm1, %v3240_v8 }
 0x2ac   : > { %v654_v32 = vpop.permute.xlu1 %653 }
 0x2ad   : > { %2833 = vmatmul.mubr.msk.f32.vlgmr.msra.gmra.mxu0 %vm422_vm2, %v654_v32  ;;  %v3045_v32 = vld [vmem:[#allocation2 + $0x18] sm:$0xff]  }
 0x2ae   : > { %2842 = vmatprep.mubr.msk.f32.mxu0 %vm3241_vm1, %v3240_v8 }
 0x35c   : > { %v493_v34 = vpop.f32.mrf.mxu1 }
 0x35d   : > { %v731_v35 = vmul.f32 0.35355338, %v493_v34  ;;  %v3046_v34 = vld [vmem:[#allocation2 + $0x10] sm:$0xff]  }
 0x35e   : > { %v2819_v36 = vpop.f32.mrf.mxu1 }
 0x35f   : > { %v735_v37 = vadd.f32 %v731_v35, %v3435_v33 }
 0x360   : > { %v571_v38 = vpop.f32.mrf.mxu1 }
 0x361   : > { %v732_v39 = vmul.f32 0.35355338, %v571_v38  ;;  %v739_v40 = vsel %vm422_vm2, %v735_v37, -inf }
 0x362   : > { %740 = vmax.xlane.f32.xlu1 %v739_v40  ;;  %v2824_v41 = vpop.f32.mrf.mxu1 }
 0x363   : > { %v736_v42 = vadd.f32 %v732_v39, %v3435_v33 }
 0x365   : > { %v742_v43 = vsel %vm422_vm2, %v736_v42, -inf }
 0x366   : > { %743 = vmax.xlane.f32.xlu0 %v742_v43 }
 0x369   : > { %v649_v44 = vpop.f32.mrf.mxu1 }
 0x36a   : > { %v733_v45 = vmul.f32 0.35355338, %v649_v44 }
 0x36b   : > { %v2829_v46 = vpop.f32.mrf.mxu1 }
 0x36c   : > { %v737_v47 = vadd.f32 %v733_v45, %v3435_v33  ;;  %v2684_v46 = vld [vmem:[%s3745_s4 + $0x3] ss:$0 sm:$0xff] }
 0x36d   : > { %v727_v48 = vpop.f32.mrf.mxu0 }
 0x36e   : > { %v734_v49 = vmul.f32 0.35355338, %v727_v48  ;;  %v745_v50 = vsel %vm422_vm2, %v737_v47, -inf }
 0x36f   : > { %746 = vmax.xlane.f32.xlu1 %v745_v50  ;;  %v2834_v51 = vpop.f32.mrf.mxu0 }
 0x370   : > { %v738_v52 = vadd.f32 %v734_v49, %v3435_v33 }
 0x372   : > { %v748_v53 = vsel %vm422_vm2, %v738_v52, -inf }
 0x373   : > { %749 = vmax.xlane.f32.xlu0 %v748_v53 }
 0x380   : > { %783 = vrot.lane.b32.xlu1 %v3394_v22, %s3249_s9 }
 0x3eb   : > { %v741_v54 = vpop.xlane.xlu1 %740 }
 0x3ec   : > { %v751_v55 = vsub.f32 %v735_v37, %v741_v54 }
 0x3ee   : > { %v755_v56 = vmul.f32 1.442695, %v751_v55 }
 0x3ef   : > { %v744_v57 = vpop.xlane.xlu0 %743 }
 0x3f0   : > { %3067 = vpow2.f32 %v755_v56  ;;  %v752_v59 = vsub.f32 %v736_v42, %v744_v57 }
 0x3f2   : > { %v757_v1 = vmul.f32 1.442695, %v752_v59  ;;  %v3047_v59 = vld [vmem:[#allocation2 + $0x28] sm:$0xff]  }
 0x3f8   : > { %v747_v58 = vpop.xlane.xlu1 %746 }
 0x3f9   : > { %v753_v7 = vsub.f32 %v737_v47, %v747_v58 }
 0x3fb   : > { %v759_v9 = vmul.f32 1.442695, %v753_v7  ;;  %v3050_v7 = vld [vmem:[#allocation2 + $0x40] sm:$0xff]  }
 0x3fc   : > { %v784_v60 = vpop.permute.xlu1 %783  ;;  %v750_v61 = vpop.xlane.xlu0 %749 }
 0x3fd   : > { %v3068_v62 = vpop.eup %3067  ;;  %v754_v63 = vsub.f32 %v738_v52, %v750_v61  ;;  %2836 = vmatpush3.msra.mxu1 %v784_v60  ;;  %v3048_v60 = vld [vmem:[#allocation2 + $0x20] sm:$0xff]  }
 0x3fe   : > { %v763_v0 = vsel %vm422_vm2, %v3068_v62, 0.0  ;;  %2845 = vmatprep.subr.mxu1 %v3240_v8 }
 0x3ff   : > { %v761_v2 = vmul.f32 1.442695, %v754_v63  ;;  %764 = vadd.xlane.f32.xlu1 %v763_v0  ;;  %v2685_v0 = vld [vmem:[%s3745_s4 + $0x4] ss:$0 sm:$0xff] }
 0x401   : > { %3069 = vpow2.f32 %v761_v2  ;;  %v2686_v2 = vld [vmem:[%s3745_s4 + $0x5] ss:$0 sm:$0xff] }
 0x402   : > { %3071 = vpow2.f32 %v757_v1 }
 0x403   : > { %3073 = vpow2.f32 %v759_v9  ;;  %v3051_v9 = vld [vmem:[#allocation2 + $0x38] sm:$0xff]  }
 0x40e   : > { %v3070_v3 = vpop.eup %3069 }
 0x40f   : > { %v772_v4 = vsel %vm422_vm2, %v3070_v3, 0.0  ;;  %v3072_v5 = vpop.eup %3071 }
 0x410   : > { %935 = vrot.lane.b32.xlu1 %v3394_v22, %s3753_s10  ;;  %773 = vadd.xlane.f32.xlu0 %v772_v4  ;;  %v766_v6 = vsel %vm422_vm2, %v3072_v5, 0.0  ;;  %v3074_v10 = vpop.eup %3073 }
 0x411   : > { %v769_v11 = vsel %vm422_vm2, %v3074_v10, 0.0 }
 0x414   : > { %767 = vadd.xlane.f32.xlu0 %v766_v6  ;;  %v3049_v6 = vld [vmem:[#allocation2 + $0x48] sm:$0xff]  }
 0x42a   : > { %859 = vrot.lane.b32.xlu0 %v3394_v22, %s3751_s11 }
 0x434   : > { %770 = vadd.xlane.f32.xlu1 %v769_v11  ;;  %v2690_v11 = vld [vmem:[%s3745_s4 + $0x6] ss:$0 sm:$0xff] }
 0x445   : > { %1011 = vrot.lane.b32.xlu1 %v3394_v22, %s3752_s12 }
 0x488   : > { %v765_v12 = vpop.xlane.xlu1 %764 }
 0x489   : > { %3075 = vrcp.f32 %v765_v12 }
 0x48c   : > { %v936_v15 = vpop.permute.xlu1 %935 }
 0x496   : > { %v3076_v13 = vpop.eup %3075 }
 0x497   : > { %v779_v14 = vmul.f32 %v3076_v13, %v3068_v62 }
 0x499   : > { %2838 = vmatmul.mubr.msk.f32.vlgmr.msra.gmra.mxu1 %vm422_vm2, %v779_v14  ;;  %v774_v16 = vpop.xlane.xlu0 %773 }
 0x49a   : > { %2846 = vmatpush3.msra.mxu1 %v936_v15  ;;  %2847 = vmatprep.mubr.msk.f32.mxu1 %vm3241_vm1, %v3240_v8 }
 0x49b   : > { %2855 = vmatprep.subr.bf16.mxu1 %v3240_v8 }
 0x49d   : > { %v768_v17 = vpop.xlane.xlu0 %767 }
 0x49e   : > { %3077 = vrcp.f32 %v768_v17 }
 0x49f   : > { %3079 = vrcp.f32 %v774_v16 }
 0x4a1   : > { %v860_v19 = vpop.permute.xlu0 %859 }
 0x4a2   : > { %2841 = vmatpush3.msra.mxu0 %v860_v19 }
 0x4a3   : > { %2850 = vmatprep.subr.mxu0 %v3240_v8 }
 0x4ab   : > { %v3078_v20 = vpop.eup %3077 }
 0x4ac   : > { %v780_v21 = vmul.f32 %v3078_v20, %v3072_v5  ;;  %v3080_v23 = vpop.eup %3079 }
 0x4ad   : > { %v782_v25 = vmul.f32 %v3080_v23, %v3070_v3 }
 0x4ae   : > { %2843 = vmatmul.mubr.msk.f32.vlgmr.msra.gmra.mxu0 %vm422_vm2, %v780_v21 }
 0x4af   : > { %2852 = vmatprep.mubr.msk.f32.mxu0 %vm3241_vm1, %v3240_v8 }
 0x4bd   : > { %v771_v22 = vpop.xlane.xlu1 %770 }
 0x4be   : > { %3081 = vrcp.f32 %v771_v22 }
 0x4c1   : > { %v1012_v24 = vpop.permute.xlu1 %1011 }
 0x4c2   : > { %2851 = vmatpush3.msra.mxu0 %v1012_v24 }
 0x4c3   : > { %2853 = vmatmul.mubr.msk.f32.vlgmr.msra.gmra.mxu0 %vm422_vm2, %v782_v25  ;;  %2863 = vmatprep.subr.bf16.mxu0 %v3240_v8 }
 0x4c4   : > { %2867 = vmatprep.mubr.msk.bf16.mxu0 %vm3241_vm1, %v3240_v8  ;;  %2864 = vmatpush3.bf16.msra.mxu0 %v3047_v59 }
 0x4c5   : > { %2865 = vmatprep.subr.bf16.mxu0 %v3240_v8 }
 0x4c8   : > { %2866 = vmatpush3.bf16.msra.mxu0 %v3048_v60 }
 0x4c9   : > { %2883 = vmatprep.subr.bf16.mxu0 %v3240_v8 }
 0x4cb   : > { %v3082_v26 = vpop.eup %3081 }
 0x4cc   : > { %v781_v27 = vmul.f32 %v3082_v26, %v3074_v10  ;;  %v3052_v10 = vld [vmem:[#allocation2 + $0x30] sm:$0xff]  }
 0x4ce   : > { %2848 = vmatmul.mubr.msk.f32.vlgmr.msra.gmra.mxu1 %vm422_vm2, %v781_v27 }
 0x4cf   : > { %2859 = vmatprep.mubr.msk.bf16.mxu1 %vm3241_vm1, %v3240_v8  ;;  %2856 = vmatpush3.bf16.msra.mxu1 %v3045_v32 }
 0x4d0   : > { %2857 = vmatprep.subr.bf16.mxu1 %v3240_v8 }
 0x4d3   : > { %2858 = vmatpush3.bf16.msra.mxu1 %v3046_v34 }
 0x4d4   : > { %2871 = vmatprep.subr.bf16.mxu1 %v3240_v8 }
 0x559   : > { %v855_v28 = vpop.f32.mrf.mxu1 }
 0x55b   : > { %v2839_v29 = vpop.f32.mrf.mxu1 }
 0x56e   : > { %v931_v30 = vpop.f32.mrf.mxu0 }
 0x56f   : > { %1088 = vrot.lane.b32.xlu0 %v931_v30, %s3750_s26 }
 0x570   : > { %v2844_v31 = vpop.f32.mrf.mxu0 }
 0x583   : > { %v1083_v35 = vpop.f32.mrf.mxu0 }
 0x584   : > { %1096 = vrot.lane.b32.xlu0 %v1083_v35, %s3748_s28 }
 0x585   : > { %v2854_v36 = vpop.f32.mrf.mxu0 }
 0x58e   : > { %v1007_v37 = vpop.f32.mrf.mxu1 }
 0x58f   : > { %1092 = vrot.lane.b32.xlu1 %v1007_v37, %s3749_s29  ;;  %s2740_s29 = sshll.u32 %s3315_s25, 7 }
 0x590   : > { %v2849_v38 = vpop.f32.mrf.mxu1 }
 0x5e1   : > { %v1089_v39 = vpop.permute.xlu0 %1088 }
 0x5e2   : > { %v1099_v40 = vsel %vm422_vm2, %v855_v28, %v1089_v39  ;;  %v2696_v28 = vld [vmem:[%s3745_s4 + $0x7] ss:$0 sm:$0xff] }
 0x5f6   : > { %v1097_v42 = vpop.permute.xlu0 %1096 }
 0x601   : > { %v1093_v41 = vpop.permute.xlu1 %1092 }
 0x602   : > { %v1101_v43 = vsel %vm1100_vm3, %v1099_v40, %v1093_v41 }
 0x603   : > { %v1103_v44 = vsel %vm1102_vm4, %v1101_v43, %v1097_v42  ;;  %v3053_v42 = vld [vmem:[#allocation2 + $0x58] sm:$0xff]   ;;  %v3054_v43 = vld [vmem:[#allocation2 + $0x50] sm:$0xff]  }
 0x604   : > { %v1104_v45 = vpack.c.bf16 %v1103_v44, %v1103_v44 }
 0x606   : > { %2860 = vmatmul.mubr.msk.bf16.vlgmr.msra.gmra.mxu1 %vm311_vm0, %v1104_v45 }
 0x607   : > { %2879 = vmatprep.mubr.msk.bf16.mxu1 %vm3241_vm1, %v3240_v8  ;;  %2872 = vmatpush3.bf16.msra.mxu1 %v3049_v6 }
 0x608   : > { %2873 = vmatprep.subr.bf16.mxu1 %v3240_v8 }
 0x60b   : > { %2874 = vmatpush3.bf16.msra.mxu1 %v3050_v7 }
 0x60c   : > { %2875 = vmatprep.subr.bf16.mxu1 %v3240_v8 }
 0x60f   : > { %2876 = vmatpush3.bf16.msra.mxu1 %v3051_v9 }
 0x610   : > { %2877 = vmatprep.subr.bf16.mxu1 %v3240_v8 }
 0x613   : > { %2878 = vmatpush3.bf16.msra.mxu1 %v3052_v10 }
 0x614   : > { %2901 = vmatprep.subr.mxu1 %v3240_v8 }
 0x6c6   : > { %v1154_v47 = vpop.f32.mrf.mxu1 }
 0x6c7   : > { %v1165_v48 = vadd.f32 %v2684_v46, %v1154_v47 }
 0x6c8   : > { %v2861_v49 = vpop.f32.mrf.mxu1 }
 0x6c9   : > { %v1166_v50 = vadd.f32 %v1165_v48, %v3384_v18  ;;  %v2697_v48 = vld [vmem:[%s3745_s4 + $0x8] ss:$0 sm:$0xff] }
 0x6ca   : > { %v1157_v51 = vpop.f32.mrf.mxu1 }
 0x6cb   : > { %v1169_v52 = vsel %vm311_vm0, %v1166_v50, 0.0 }
 0x6cc   : > { %1170 = vadd.xlane.f32.xlu1 %v1169_v52  ;;  %v2862_v53 = vpop.f32.mrf.mxu1 }
 0x755   : > { %v1171_v54 = vpop.xlane.xlu1 %1170 }
 0x756   : > { %v1172_v55 = vmul.f32 0.03125, %v1171_v54  ;;  %v2702_v54 = vld [vmem:[%s3745_s4 + $0xa] ss:$0 sm:$0xff] }
 0x758   : > { %v1173_v56 = vsub.f32 %v1166_v50, %v1172_v55  ;;  %v2698_v50 = vld [vmem:[%s3745_s4 + $0x9] ss:$0 sm:$0xff] }
 0x75a   : > { %v1174_v57 = vmul.f32 %v1173_v56, %v1173_v56 }
 0x75c   : > { %v1175_v58 = vsel %vm311_vm0, %v1174_v57, 0.0 }
 0x75d   : > { %1176 = vadd.xlane.f32.xlu0 %v1175_v58 }
 0x7e6   : > { %v1177_v18 = vpop.xlane.xlu0 %1176 }
 0x7e7   : > { %v1178_v61 = vmul.f32 0.03125, %v1177_v18 }
 0x7e9   : > { %v1179_v62 = vadd.f32 1e-12, %v1178_v61 }
 0x7eb   : > { %3083 = vrsqrt.f32 %v1179_v62 }
 0x7f8   : > { %v3084_v63 = vpop.eup %3083 }
 0x7f9   : > { %v1181_v1 = vmul.f32 %v3084_v63, %v1173_v56 }
 0x7fb   : > { %v1186_v3 = vmul.f32 %v2685_v0, %v1181_v1 }
 0x7fd   : > { %v1191_v4 = vadd.f32 %v2686_v2, %v1186_v3 }
 0x7ff   : > { %v1192_v5 = vpack.c.bf16 %v1191_v4, %v1191_v4 }
 0x801   : > { %2868 = vmatmul.mubr.msk.bf16.vlgmr.msra.gmra.mxu0 %vm311_vm0, %v1192_v5 }
 0x802   : > { %2887 = vmatprep.mubr.msk.bf16.mxu0 %vm3241_vm1, %v3240_v8  ;;  %2884 = vmatpush3.bf16.msra.mxu0 %v3053_v42 }
 0x803   : > { %2885 = vmatprep.subr.bf16.mxu0 %v3240_v8 }
 0x806   : > { %2886 = vmatpush3.bf16.msra.mxu0 %v3054_v43 }
 0x807   : > { %2891 = vmatprep.subr.mxu0 %v3240_v8 }
 0x8c1   : > { %v1242_v12 = vpop.f32.mrf.mxu0 }
 0x8c2   : > { %v1253_v13 = vadd.f32 %v2690_v11, %v1242_v12 }
 0x8c3   : > { %v2869_v14 = vpop.f32.mrf.mxu0 }
 0x8c4   : > { %v1255_v15 = vmul.f32 0.044715, %v1253_v13  ;;  %v1254_v24 = vmul.f32 0.5, %v1253_v13 }
 0x8c5   : > { %v1245_v16 = vpop.f32.mrf.mxu0 }
 0x8c6   : > { %v1256_v17 = vmul.f32 %v1255_v15, %v1253_v13 }
 0x8c7   : > { %v2870_v19 = vpop.f32.mrf.mxu0 }
 0x8c8   : > { %v1257_v20 = vmul.f32 %v1256_v17, %v1253_v13 }
 0x8ca   : > { %v1258_v21 = vadd.f32 %v1257_v20, %v1253_v13 }
 0x8cc   : > { %v1259_v22 = vmul.f32 0.7978846, %v1258_v21 }
 0x8ce   : > { %3085 = vtanh.f32 %v1259_v22 }
 0x8db   : > { %v3086_v23 = vpop.eup %3085 }
 0x8dc   : > { %v1261_v25 = vadd.f32 1.0, %v3086_v23 }
 0x8de   : > { %v1262_v26 = vmul.f32 %v1261_v25, %v1254_v24 }
 0x8e0   : > { %v1263_v27 = vpack.c.bf16 %v1262_v26, %v1262_v26 }
 0x8e2   : > { %2880 = vmatmul.mubr.msk.bf16.vlgmr.msra.gmra.mxu1 %vm1288_vm5, %v1263_v27 }
 0x8e3   : > { %2903 = vmatprep.mubr.msk.f32.mxu1 %vm3241_vm1, %v3240_v8 }
 0x9a2   : > { %v1326_v29 = vpop.f32.mrf.mxu1 }
 0x9a3   : > { %v1337_v30 = vadd.f32 %v2696_v28, %v1326_v29 }
 0x9a4   : > { %v2881_v31 = vpop.f32.mrf.mxu1 }
 0x9a5   : > { %v1338_v32 = vadd.f32 %v1337_v30, %v1191_v4 }
 0x9a6   : > { %v1329_v34 = vpop.f32.mrf.mxu1 }
 0x9a7   : > { %v1341_v35 = vsel %vm311_vm0, %v1338_v32, 0.0 }
 0x9a8   : > { %1342 = vadd.xlane.f32.xlu0 %v1341_v35  ;;  %v2882_v36 = vpop.f32.mrf.mxu1 }
 0xa31   : > { %v1343_v37 = vpop.xlane.xlu0 %1342 }
 0xa32   : > { %v1344_v38 = vmul.f32 0.03125, %v1343_v37 }
 0xa34   : > { %v1345_v39 = vsub.f32 %v1338_v32, %v1344_v38 }
 0xa36   : > { %v1346_v40 = vmul.f32 %v1345_v39, %v1345_v39 }
 0xa38   : > { %v1347_v41 = vsel %vm311_vm0, %v1346_v40, 0.0 }
 0xa39   : > { %1348 = vadd.xlane.f32.xlu1 %v1347_v41 }
 0xac2   : > { %v1349_v44 = vpop.xlane.xlu1 %1348 }
 0xac3   : > { %v1350_v45 = vmul.f32 0.03125, %v1349_v44 }
 0xac5   : > { %v1351_v46 = vadd.f32 1e-12, %v1350_v45 }
 0xac7   : > { %3087 = vrsqrt.f32 %v1351_v46 }
 0xad4   : > { %v3088_v47 = vpop.eup %3087 }
 0xad5   : > { %v1353_v49 = vmul.f32 %v3088_v47, %v1345_v39 }
 0xad7   : > { %v1358_v51 = vmul.f32 %v2697_v48, %v1353_v49 }
 0xad9   : > { %v3524_v52 = vadd.f32 %v2698_v50, %v1358_v51 }
 0xadb   : > { %v1384_v53 = vpack.c.bf16 %v3524_v52, %v3524_v52 }
 0xadd   : > { %2888 = vmatmul.mubr.msk.bf16.vlgmr.msra.gmra.mxu0 %vm311_vm0, %v1384_v53 }
 0xade   : > { %2893 = vmatprep.mubr.msk.f32.mxu0 %vm3241_vm1, %v3240_v8 }
 0xb9d   : > { %v1434_v55 = vpop.f32.mrf.mxu0 }
 0xb9e   : > { %v3534_v56 = vadd.f32 %v2702_v54, %v1434_v55 }
 0xb9f   : > { %v2889_v57 = vpop.f32.mrf.mxu0 }
 0xba0   : > { %1525 = vrot.lane.b32.xlu1 %v3534_v56, %s3244_s15  ;;  %1447 = vrot.lane.b32.xlu0 %v3534_v56, %s3243_s14  ;;  %s3758_s14 = smov 40   ;;  %s3759_s15 = smov 56  }
 0xba1   : > { %v1437_v58 = vpop.f32.mrf.mxu0 }
 0xba3   : > { %v2890_v59 = vpop.f32.mrf.mxu0 }
 0xba4   : > { %1523 = vrot.lane.b32.xlu1 %v3534_v56, %s3242_s13  ;;  %1603 = vrot.lane.b32.xlu0 %v3534_v56, %s3245_s16  ;;  %s3757_s13 = smov 48   ;;  %s3760_s16 = smov 8  }
 0xba8   : > { %1681 = vrot.lane.b32.xlu1 %v3534_v56, %s3246_s17  ;;  %1601 = vrot.lane.b32.xlu0 %v3534_v56, %s3247_s19  ;;  %s3761_s17 = smov 16   ;;  %s3762_s19 = smov 24  }
 0xbac   : > { %1679 = vrot.lane.b32.xlu1 %v3534_v56, %s3248_s20  ;;  %s3257_s20 = smov [#allocation5]  }
 0xc12   : > { %v1526_v60 = vpop.permute.xlu1 %1525  ;;  %v1448_v18 = vpop.permute.xlu0 %1447 }
 0xc13   : > { %2892 = vmatpush3.xpose.msk.msra.mxu0 %vm422_vm2, %v1448_v18  ;;  %v3055_v18 = vld [vmem:[#allocation2 + $0x68] sm:$0xff]  }
 0xc14   : > { %2896 = vmatprep.subr.mxu0 %v3240_v8 }
 0xc16   : > { %v1524_v61 = vpop.permute.xlu1 %1523  ;;  %2894 = vmatmul.mubr.msk.f32.vlgmr.msra.gmra.mxu0 %vm422_vm2, %v3534_v56  ;;  %v1604_v62 = vpop.permute.xlu0 %1603 }
 0xc17   : > { %2897 = vmatpush3.xpose.msk.msra.mxu0 %vm422_vm2, %v1526_v60  ;;  %2902 = vmatpush3.xpose.msk.msra.mxu1 %vm422_vm2, %v1604_v62 }
 0xc18   : > { %2898 = vmatprep.mubr.msk.f32.mxu0 %vm3241_vm1, %v3240_v8  ;;  %2906 = vmatprep.subr.mxu0 %v3240_v8 }
 0xc19   : > { %2911 = vmatprep.subr.mxu1 %v3240_v8 }
 0xc1a   : > { %v1682_v63 = vpop.permute.xlu1 %1681  ;;  %2899 = vmatmul.mubr.msk.f32.vlgmr.msra.gmra.mxu0 %vm422_vm2, %v1524_v61  ;;  %v1602_v0 = vpop.permute.xlu0 %1601  ;;  %v3056_v61 = vld [vmem:[#allocation2 + $0x60] sm:$0xff]  }
 0xc1b   : > { %2904 = vmatmul.mubr.msk.f32.vlgmr.msra.gmra.mxu1 %vm422_vm2, %v1602_v0  ;;  %2907 = vmatpush3.xpose.msk.msra.mxu0 %vm422_vm2, %v1682_v63 }
 0xc1c   : > { %2908 = vmatprep.mubr.msk.f32.mxu0 %vm3241_vm1, %v3240_v8  ;;  %2916 = vmatprep.subr.mxu0 %v3240_v8 }
 0xc1d   : > { %2913 = vmatprep.mubr.msk.f32.mxu1 %vm3241_vm1, %v3240_v8 }
 0xc1e   : > { %v1680_v1 = vpop.permute.xlu1 %1679 }
 0xc1f   : > { %2909 = vmatmul.mubr.msk.f32.vlgmr.msra.gmra.mxu0 %vm422_vm2, %v1680_v1 }
 0xc20   : > { %2918 = vmatprep.mubr.msk.f32.mxu0 %vm3241_vm1, %v3240_v8 }
 0xcd6   : > { %v1519_v2 = vpop.f32.mrf.mxu0 }
 0xcd7   : > { %v1757_v3 = vmul.f32 0.35355338, %v1519_v2 }
 0xcd8   : > { %v2895_v4 = vpop.f32.mrf.mxu0 }
 0xcd9   : > { %v1761_v5 = vadd.f32 %v1757_v3, %v3435_v33 }
 0xcda   : > { %v1597_v6 = vpop.f32.mrf.mxu0 }
 0xcdb   : > { %v1758_v7 = vmul.f32 0.35355338, %v1597_v6  ;;  %v1675_v9 = vpop.f32.mrf.mxu1  ;;  %v1765_v10 = vsel %vm422_vm2, %v1761_v5, -inf }
 0xcdc   : > { %v1759_v11 = vmul.f32 0.35355338, %v1675_v9  ;;  %1766 = vmax.xlane.f32.xlu0 %v1765_v10  ;;  %v2900_v12 = vpop.f32.mrf.mxu0 }
 0xcdd   : > { %v2905_v13 = vpop.f32.mrf.mxu1  ;;  %v1762_v14 = vadd.f32 %v1758_v7, %v3435_v33 }
 0xcde   : > { %v1763_v15 = vadd.f32 %v1759_v11, %v3435_v33 }
 0xcdf   : > { %v1753_v16 = vpop.f32.mrf.mxu0  ;;  %v1768_v17 = vsel %vm422_vm2, %v1762_v14, -inf }
 0xce0   : > { %v1760_v19 = vmul.f32 0.35355338, %v1753_v16  ;;  %1769 = vmax.xlane.f32.xlu1 %v1768_v17  ;;  %v1771_v20 = vsel %vm422_vm2, %v1763_v15, -inf }
 0xce1   : > { %1772 = vmax.xlane.f32.xlu0 %v1771_v20  ;;  %v2910_v21 = vpop.f32.mrf.mxu0 }
 0xce2   : > { %v1764_v22 = vadd.f32 %v1760_v19, %v3435_v33 }
 0xce4   : > { %v1774_v23 = vsel %vm422_vm2, %v1764_v22, -inf }
 0xce5   : > { %1775 = vmax.xlane.f32.xlu0 %v1774_v23 }
 0xcf1   : > { %1809 = vrot.lane.b32.xlu1 %v3534_v56, %s3249_s9  ;;  %s3145_s9 = sshll.u32 %s3257_s20, 4  ;;  %s3146_s9 = int_to_ptr.vmem [resolvable:$false] %s3145_s9 }
 0xcf2   : > { %s3147_s10 = scalar_lea.vmem %s3146_s9, 256 }
 0xd65   : > { %v1767_v24 = vpop.xlane.xlu0 %1766 }
 0xd66   : > { %v1777_v25 = vsub.f32 %v1761_v5, %v1767_v24 }
 0xd68   : > { %v1781_v26 = vmul.f32 1.442695, %v1777_v25 }
 0xd69   : > { %v1770_v27 = vpop.xlane.xlu1 %1769 }
 0xd6a   : > { %3089 = vpow2.f32 %v1781_v26  ;;  %v1778_v28 = vsub.f32 %v1762_v14, %v1770_v27  ;;  %v1773_v29 = vpop.xlane.xlu0 %1772  ;;  %v2718_v14 = vld [vmem:[%s3745_s4 + $0xb] ss:$0 sm:$0xff] }
 0xd6b   : > { %v1779_v30 = vsub.f32 %v1763_v15, %v1773_v29  ;;  %v3058_v29 = vld [vmem:[#allocation2 + $0x70] sm:$0xff]  }
 0xd6c   : > { %v1783_v31 = vmul.f32 1.442695, %v1778_v28  ;;  %v3057_v28 = vld [vmem:[#allocation2 + $0x78] sm:$0xff]  }
 0xd6d   : > { %v1785_v32 = vmul.f32 1.442695, %v1779_v30  ;;  %v1810_v34 = vpop.permute.xlu1 %1809 }
 0xd6e   : > { %3091 = vpow2.f32 %v1783_v31  ;;  %2912 = vmatpush3.msra.mxu1 %v1810_v34  ;;  %v1776_v33 = vpop.xlane.xlu0 %1775  ;;  %v2719_v34 = vld [vmem:[%s3745_s4 + $0xc] ss:$0 sm:$0xff] }
 0xd6f   : > { %3093 = vpow2.f32 %v1785_v32  ;;  %v1780_v35 = vsub.f32 %v1764_v22, %v1776_v33  ;;  %2921 = vmatprep.subr.mxu1 %v3240_v8 }
 0xd71   : > { %v1787_v36 = vmul.f32 1.442695, %v1780_v35  ;;  %v2720_v35 = vld [vmem:[%s3745_s4 + $0xd] ss:$0 sm:$0xff] }
 0xd73   : > { %3095 = vpow2.f32 %v1787_v36 }
 0xd77   : > { %v3090_v37 = vpop.eup %3089 }
 0xd78   : > { %v1789_v38 = vsel %vm422_vm2, %v3090_v37, 0.0 }
 0xd79   : > { %1790 = vadd.xlane.f32.xlu1 %v1789_v38 }
 0xd7b   : > { %v3092_v39 = vpop.eup %3091 }
 0xd7c   : > { %v3094_v40 = vpop.eup %3093  ;;  %v1792_v41 = vsel %vm422_vm2, %v3092_v39, 0.0 }
 0xd7d   : > { %1793 = vadd.xlane.f32.xlu0 %v1792_v41  ;;  %v1795_v42 = vsel %vm422_vm2, %v3094_v40, 0.0  ;;  %v3061_v41 = vld [vmem:[#allocation2 + $0x88] sm:$0xff]  }
 0xd7e   : > { %1796 = vadd.xlane.f32.xlu1 %v1795_v42  ;;  %v3062_v42 = vld [vmem:[#allocation2 + $0x80] sm:$0xff]  }
 0xd80   : > { %v3096_v43 = vpop.eup %3095 }
 0xd81   : > { %v1798_v44 = vsel %vm422_vm2, %v3096_v43, 0.0 }
 0xd82   : > { %1799 = vadd.xlane.f32.xlu0 %v1798_v44 }
 0xd8f   : > { %1961 = vrot.lane.b32.xlu1 %v3534_v56, %s3757_s13 }
 0xd93   : > { %2037 = vrot.lane.b32.xlu1 %v3534_v56, %s3758_s14 }
 0xd98   : > { %1885 = vrot.lane.b32.xlu0 %v3534_v56, %s3759_s15  ;;  %s3678_s15 = scalar_lea.hbm %s3746_s5, %s2740_s29 }
 0xe02   : > { %v1791_v45 = vpop.xlane.xlu1 %1790 }
 0xe03   : > { %3097 = vrcp.f32 %v1791_v45 }
 0xe06   : > { %v1794_v46 = vpop.xlane.xlu0 %1793 }
 0xe07   : > { %3099 = vrcp.f32 %v1794_v46  ;;  %v1797_v47 = vpop.xlane.xlu1 %1796 }
 0xe08   : > { %3101 = vrcp.f32 %v1797_v47 }
 0xe0b   : > { %v1800_v48 = vpop.xlane.xlu0 %1799  ;;  %v1962_v51 = vpop.permute.xlu1 %1961 }
 0xe0c   : > { %3103 = vrcp.f32 %v1800_v48 }
 0xe0f   : > { %v1886_v49 = vpop.permute.xlu0 %1885  ;;  %v2038_v58 = vpop.permute.xlu1 %2037 }
 0xe10   : > { %v3098_v50 = vpop.eup %3097  ;;  %2917 = vmatpush3.msra.mxu0 %v1886_v49 }
 0xe11   : > { %v1805_v53 = vmul.f32 %v3098_v50, %v3090_v37  ;;  %2926 = vmatprep.subr.mxu0 %v3240_v8 }
 0xe13   : > { %2914 = vmatmul.mubr.msk.f32.vlgmr.msra.gmra.mxu1 %vm422_vm2, %v1805_v53 }
 0xe14   : > { %v3100_v54 = vpop.eup %3099  ;;  %2922 = vmatpush3.msra.mxu1 %v1962_v51  ;;  %2923 = vmatprep.mubr.msk.f32.mxu1 %vm3241_vm1, %v3240_v8 }
 0xe15   : > { %v3102_v55 = vpop.eup %3101  ;;  %v1806_v56 = vmul.f32 %v3100_v54, %v3092_v39  ;;  %2931 = vmatprep.subr.bf16.mxu1 %v3240_v8  ;;  %v3059_v39 = vld [vmem:[#allocation2 + $0x98] sm:$0xff]  }
 0xe16   : > { %v1807_v57 = vmul.f32 %v3102_v55, %v3094_v40  ;;  %v3060_v40 = vld [vmem:[#allocation2 + $0x90] sm:$0xff]  }
 0xe17   : > { %2919 = vmatmul.mubr.msk.f32.vlgmr.msra.gmra.mxu0 %vm422_vm2, %v1806_v56 }
 0xe18   : > { %2927 = vmatpush3.msra.mxu0 %v2038_v58  ;;  %2924 = vmatmul.mubr.msk.f32.vlgmr.msra.gmra.mxu1 %vm422_vm2, %v1807_v57 }
 0xe19   : > { %v3104_v59 = vpop.eup %3103  ;;  %2928 = vmatprep.mubr.msk.f32.mxu0 %vm3241_vm1, %v3240_v8  ;;  %2935 = vmatprep.mubr.msk.bf16.mxu1 %vm3241_vm1, %v3240_v8 }
 0xe1a   : > { %v1808_v60 = vmul.f32 %v3104_v59, %v3096_v43  ;;  %2939 = vmatprep.subr.bf16.mxu0 %v3240_v8  ;;  %2932 = vmatpush3.bf16.msra.mxu1 %v3055_v18  ;;  %v2724_v43 = vld [vmem:[%s3745_s4 + $0xe] ss:$0 sm:$0xff] }
 0xe1b   : > { %2933 = vmatprep.subr.bf16.mxu1 %v3240_v8 }
 0xe1c   : > { %2929 = vmatmul.mubr.msk.f32.vlgmr.msra.gmra.mxu0 %vm422_vm2, %v1808_v60  ;;  %v2730_v60 = vld [vmem:[%s3745_s4 + $0xf] ss:$0 sm:$0xff] }
 0xe1d   : > { %2943 = vmatprep.mubr.msk.bf16.mxu0 %vm3241_vm1, %v3240_v8  ;;  %2940 = vmatpush3.bf16.msra.mxu0 %v3057_v28 }
 0xe1e   : > { %2934 = vmatpush3.bf16.msra.mxu1 %v3056_v61  ;;  %2941 = vmatprep.subr.bf16.mxu0 %v3240_v8 }
 0xe1f   : > { %2947 = vmatprep.subr.bf16.mxu1 %v3240_v8 }
 0xe21   : > { %2942 = vmatpush3.bf16.msra.mxu0 %v3058_v29 }
 0xe22   : > { %2959 = vmatprep.subr.bf16.mxu0 %v3240_v8 }
 0xed3   : > { %v1881_v62 = vpop.f32.mrf.mxu1 }
 0xed5   : > { %v2915_v63 = vpop.f32.mrf.mxu1 }
 0xed7   : > { %v1957_v0 = vpop.f32.mrf.mxu0 }
 0xed8   : > { %v2033_v1 = vpop.f32.mrf.mxu1  ;;  %2114 = vrot.lane.b32.xlu0 %v1957_v0, %s3760_s16 }
 0xed9   : > { %2118 = vrot.lane.b32.xlu1 %v2033_v1, %s3761_s17  ;;  %v2920_v2 = vpop.f32.mrf.mxu0  ;;  %s306_s17 = scalar_lea.vmem %s3743_s2, %s3362_s18  ;;  %s3660_s18 = sand.u32 1, %s3227_s22  }
 0xeda   : > { %v2925_v3 = vpop.f32.mrf.mxu1  ;;  %s2658_s12 = sshll.u32 %s3660_s18, 3 }
 0xedb   : > { %s3668_s28 = scalar_lea.vmem [#allocation5], %s2658_s12 }
 0xedc   : > { %v2109_v4 = vpop.f32.mrf.mxu0  ;;  %s2512_s16 = sshll.u32 %s3668_s28, 4  ;;  %s2513_s16 = int_to_ptr.vmem [resolvable:$true] %s2512_s16 }
 0xedd   : > { %2122 = vrot.lane.b32.xlu0 %v2109_v4, %s3762_s19  ;;  %s3141_s19 = scalar_lea.vmem %s2513_s16, 128  ;;  %p3148_p11 = scmp.lt.s32.totalorder %s2513_s16, %s3146_s9 }
 0xede   : > { %v2930_v5 = vpop.f32.mrf.mxu0  ;;  %p3142_p6 = scmp.ne.s32.totalorder %s2513_s16, %s3141_s19  ;;  %p3149_p12 = scmp.lt.s32.totalorder %s3147_s10, %s3141_s19 }
 0xee0   : > { %p3143_p9 = pnand %p3142_p6, %p3332_p5  ;;  %p3150_p13 = por %p3149_p12, %p3148_p11 }
 0xee2   : > { %p3144_p10 = pneg %p3143_p9 }
 0xee4   : > { %p3151_p0 = pnand %p3150_p13, %p3144_p10 }
 0xf4a   : > { %v2115_v6 = vpop.permute.xlu0 %2114 }
 0xf4b   : > { %v2125_v7 = vsel %vm422_vm2, %v1881_v62, %v2115_v6  ;;  %v2119_v9 = vpop.permute.xlu1 %2118 }
 0xf4c   : > { %v2126_v10 = vsel %vm1100_vm3, %v2125_v7, %v2119_v9  ;;  %v3063_v9 = vld [vmem:[#allocation2 + $0xa8] sm:$0xff]  }
 0xf4f   : > { %v2123_v11 = vpop.permute.xlu0 %2122 }
 0xf50   : > { %v2127_v12 = vsel %vm1102_vm4, %v2126_v10, %v2123_v11  ;;  %v3064_v10 = vld [vmem:[#allocation2 + $0xa0] sm:$0xff]   ;;  %v3256_v11 = vmov 0  }
 0xf51   : > { %v2128_v13 = vpack.c.bf16 %v2127_v12, %v2127_v12  ;;  %3041 = vset.pattern.permute.xlu1 %v3256_v11  ;;  %v2453_v12 = vld [vmem:[%s306_s17] sm:$0xff]  ;;  %3042 = vset.pattern.permute.xlu0 %v3256_v11  ;;  %s2494_s17 = scalar_lea.sflag [#allocation4], %s3660_s18 }
 0xf52   : > { %vm2474_vm7 = vcmp.ne.s32.totalorder %v2453_v12, 0 }
 0xf53   : > { %2936 = vmatmul.mubr.msk.bf16.vlgmr.msra.gmra.mxu1 %vm311_vm0, %v2128_v13 }
 0xf54   : > { %2955 = vmatprep.mubr.msk.bf16.mxu1 %vm3241_vm1, %v3240_v8  ;;  %2948 = vmatpush3.bf16.msra.mxu1 %v3059_v39 }
 0xf55   : > { %2949 = vmatprep.subr.bf16.mxu1 %v3240_v8 }
 0xf58   : > { %2950 = vmatpush3.bf16.msra.mxu1 %v3060_v40 }
 0xf59   : > { %2951 = vmatprep.subr.bf16.mxu1 %v3240_v8 }
 0xf5c   : > { %2952 = vmatpush3.bf16.msra.mxu1 %v3061_v41 }
 0xf5d   : > { %2953 = vmatprep.subr.bf16.mxu1 %v3240_v8 }
 0xf60   : > { %2954 = vmatpush3.bf16.msra.mxu1 %v3062_v42 }
0x1013   : > { %v2178_v15 = vpop.f32.mrf.mxu1 }
0x1014   : > { %v2189_v16 = vadd.f32 %v2718_v14, %v2178_v15 }
0x1015   : > { %v2937_v17 = vpop.f32.mrf.mxu1 }
0x1016   : > { %v2190_v19 = vadd.f32 %v2189_v16, %v3524_v52  ;;  %v2731_v17 = vld [vmem:[%s3745_s4 + $0x10] ss:$0 sm:$0xff] }
0x1017   : > { %v2181_v20 = vpop.f32.mrf.mxu1 }
0x1018   : > { %v2193_v21 = vsel %vm311_vm0, %v2190_v19, 0.0  ;;  %v2732_v20 = vld [vmem:[%s3745_s4 + $0x11] ss:$0 sm:$0xff] }
0x1019   : > { %2194 = vadd.xlane.f32.xlu1 %v2193_v21  ;;  %v2938_v22 = vpop.f32.mrf.mxu1 }
0x10a2   : > { %v2195_v23 = vpop.xlane.xlu1 %2194 }
0x10a3   : > { %v2196_v24 = vmul.f32 0.03125, %v2195_v23 }
0x10a5   : > { %v2197_v25 = vsub.f32 %v2190_v19, %v2196_v24  ;;  %v2733_v24 = vld [vmem:[%s3745_s4 + $0x12] ss:$0 sm:$0xff] }
0x10a7   : > { %v2198_v26 = vmul.f32 %v2197_v25, %v2197_v25 }
0x10a9   : > { %v2199_v27 = vsel %vm311_vm0, %v2198_v26, 0.0 }
0x10aa   : > { %2200 = vadd.xlane.f32.xlu0 %v2199_v27 }
0x1133   : > { %v2201_v52 = vpop.xlane.xlu0 %2200 }
0x1134   : > { %v2202_v30 = vmul.f32 0.03125, %v2201_v52 }
0x1136   : > { %v2203_v31 = vadd.f32 1e-12, %v2202_v30 }
0x1138   : > { %3105 = vrsqrt.f32 %v2203_v31 }
0x1145   : > { %v3106_v32 = vpop.eup %3105 }
0x1146   : > { %v2205_v33 = vmul.f32 %v3106_v32, %v2197_v25  ;;  %v2464_v32 = vlaneseq }
0x1148   : > { %v2210_v36 = vmul.f32 %v2719_v34, %v2205_v33  ;;  %v2465_v34 = vand.u32 127, %v2464_v32 }
0x114a   : > { %v2215_v37 = vadd.f32 %v2720_v35, %v2210_v36 }
0x114c   : > { %v2216_v38 = vpack.c.bf16 %v2215_v37, %v2215_v37 }
0x114e   : > { %2944 = vmatmul.mubr.msk.bf16.vlgmr.msra.gmra.mxu0 %vm311_vm0, %v2216_v38 }
0x114f   : > { %2963 = vmatprep.mubr.msk.bf16.mxu0 %vm3241_vm1, %v3240_v8  ;;  %2960 = vmatpush3.bf16.msra.mxu0 %v3063_v9 }
0x1150   : > { %2961 = vmatprep.subr.bf16.mxu0 %v3240_v8 }
0x1153   : > { %2962 = vmatpush3.bf16.msra.mxu0 %v3064_v10 }
0x120e   : > { %v2266_v44 = vpop.f32.mrf.mxu0 }
0x120f   : > { %v2277_v45 = vadd.f32 %v2724_v43, %v2266_v44 }
0x1210   : > { %v2945_v46 = vpop.f32.mrf.mxu0 }
0x1211   : > { %v2279_v47 = vmul.f32 0.044715, %v2277_v45  ;;  %v2278_v56 = vmul.f32 0.5, %v2277_v45 }
0x1212   : > { %v2269_v48 = vpop.f32.mrf.mxu0 }
0x1213   : > { %v2280_v49 = vmul.f32 %v2279_v47, %v2277_v45 }
0x1214   : > { %v2946_v50 = vpop.f32.mrf.mxu0 }
0x1215   : > { %v2281_v51 = vmul.f32 %v2280_v49, %v2277_v45 }
0x1217   : > { %v2282_v53 = vadd.f32 %v2281_v51, %v2277_v45 }
0x1219   : > { %v2283_v54 = vmul.f32 0.7978846, %v2282_v53 }
0x121b   : > { %3107 = vtanh.f32 %v2283_v54 }
0x1228   : > { %v3108_v55 = vpop.eup %3107 }
0x1229   : > { %v2285_v57 = vadd.f32 1.0, %v3108_v55 }
0x122b   : > { %v2286_v58 = vmul.f32 %v2285_v57, %v2278_v56 }
0x122d   : > { %v2287_v59 = vpack.c.bf16 %v2286_v58, %v2286_v58 }
0x122f   : > { %2956 = vmatmul.mubr.msk.bf16.vlgmr.msra.gmra.mxu1 %vm1288_vm5, %v2287_v59 }
0x12ef   : > { %v2349_v18 = vpop.f32.mrf.mxu1 }
0x12f0   : > { %v2360_v61 = vadd.f32 %v2730_v60, %v2349_v18 }
0x12f1   : > { %v2957_v62 = vpop.f32.mrf.mxu1 }
0x12f2   : > { %v2361_v63 = vadd.f32 %v2360_v61, %v2215_v37  ;;  %v2737_v37 = vsel %vm2474_vm7, 1.0, %v3240_v8 }
0x12f3   : > { %v2352_v0 = vpop.f32.mrf.mxu1 }
0x12f4   : > { %v2364_v1 = vsel %vm311_vm0, %v2361_v63, 0.0 }
0x12f5   : > { %2365 = vadd.xlane.f32.xlu0 %v2364_v1  ;;  %v2958_v2 = vpop.f32.mrf.mxu1 }
0x137e   : > { %v2366_v3 = vpop.xlane.xlu0 %2365 }
0x137f   : > { %v2367_v4 = vmul.f32 0.03125, %v2366_v3 }
0x1381   : > { %v2368_v5 = vsub.f32 %v2361_v63, %v2367_v4 }
0x1383   : > { %v2369_v6 = vmul.f32 %v2368_v5, %v2368_v5 }
0x1385   : > { %v2370_v7 = vsel %vm311_vm0, %v2369_v6, 0.0 }
0x1386   : > { %2371 = vadd.xlane.f32.xlu1 %v2370_v7 }
0x1397   : > { %2467 = vperm.xlu1 %3041, %v2453_v12  }
0x140f   : > { %v2372_v13 = vpop.xlane.xlu1 %2371 }
0x1410   : > { %v2373_v14 = vmul.f32 0.03125, %v2372_v13 }
0x1412   : > { %v2374_v15 = vadd.f32 1e-12, %v2373_v14 }
0x1413   : > { %v2468_v33 = vpop.permute.xlu1 %2467 }
0x1414   : > { %3109 = vrsqrt.f32 %v2374_v15  ;;  %vm2469_vm6 = vcmp.eq.s32.totalorder %v2465_v34, %v2468_v33 }
0x1421   : > { %v3110_v16 = vpop.eup %3109 }
0x1422   : > { %v2376_v19 = vmul.f32 %v3110_v16, %v2368_v5 }
0x1424   : > { %v2381_v21 = vmul.f32 %v2731_v17, %v2376_v19 }
0x1426   : > { %v2386_v22 = vadd.f32 %v2732_v20, %v2381_v21 }
0x1428   : > { %v2392_v23 = vpack.c.bf16 %v2386_v22, %v2386_v22 }
0x142a   : > { %2964 = vmatmul.mubr.msk.bf16.vlgmr.msra.gmra.mxu0 %vm311_vm0, %v2392_v23 }
0x14ea   : > { %v2446_v25 = vpop.f32.mrf.mxu0 }
0x14eb   : > { %v2447_v26 = vadd.f32 %v2733_v24, %v2446_v25 }
0x14ec   : > { %v2965_v27 = vpop.f32.mrf.mxu0 }
0x14ed   : > { %2454 = vmax.xlane.f32.xlu0 %v2447_v26  ;;  %2452 = vst [vmem:[%s3668_s28] sm:$0xff] %v2447_v26  ;;  %v2470_v36 = vsel %vm2469_vm6, %v2447_v26, 0.0 }
0x14ee   : > { %v2449_v28 = vpop.f32.mrf.mxu0 }
0x14f0   : > { %v2966_v29 = vpop.f32.mrf.mxu0 }
0x1576   : > { %v2455_v52 = vpop.xlane.xlu0 %2454 }
0x1577   : > { %v2456_v30 = vsub.f32 %v2447_v26, %v2455_v52 }
0x1579   : > { %v2457_v31 = vmul.f32 1.442695, %v2456_v30 }
0x157b   : > { %3111 = vpow2.f32 %v2457_v31 }
0x1588   : > { %v3112_v35 = vpop.eup %3111 }
0x1589   : > { %2459 = vadd.xlane.f32.xlu0 %v3112_v35 }
0x158d   : > { %2471 = vadd.xlane.f32.xlu0 %v2470_v36 }
0x15a3   : > { %2482 = vperm.xlu0 %3042, %v2737_v37  }
0x1612   : > { %v2460_v38 = vpop.xlane.xlu0 %2459 }
0x1613   : > { %3113 = vlog2.f32 %v2460_v38 }
0x1616   : > { %v2472_v42 = vpop.xlane.xlu0 %2471 }
0x1620   : > { %v3114_v39 = vpop.eup %3113 }
0x1621   : > { %v2462_v40 = vmul.f32 0.6931472, %v3114_v39 }
0x1623   : > { %v2463_v41 = vadd.f32 %v2462_v40, %v2455_v52 }
0x1625   : > { %v2473_v43 = vsub.f32 %v2463_v41, %v2472_v42 }
0x1627   : > { %v2478_v44 = vmul.f32 %v2737_v37, %v2473_v43 }
0x1629   : > { %2488 = vperm.xlu1 %3041, %v2478_v44  }
0x162a   : > { %3154 = shalt.err (!%p3151_p0)
}
0x162b   : > { %s3155_s11 = scalar_lea.hbm %s3678_s15, 128  ;;  %s3159_s13 = scalar_lea.hbm %s3746_s5, 256 }
0x162c   : > { %p3156_p1 = scmp.ne.s32.totalorder %s3678_s15, %s3155_s11  ;;  %p3160_p4 = scmp.lt.s32.totalorder %s3678_s15, %s3746_s5 }
0x162d   : > { %p3161_p7 = scmp.lt.s32.totalorder %s3159_s13, %s3155_s11 }
0x162e   : > { %p3157_p2 = pnand %p3156_p1, %p3332_p5 }
0x162f   : > { %p3162_p8 = por %p3161_p7, %p3160_p4 }
0x1630   : > { %p3158_p3 = pneg %p3157_p2 }
0x1632   : > { %p3163_p6 = pnand %p3162_p8, %p3158_p3 }
0x1634   : > { %3166 = shalt.err (!%p3163_p6)
}
0x1635   : > { %2971 = dma.vmem_to_hbm [thread:$0]  (%p3332_p5), %s2513_s16, 128, %s3678_s15, %s2494_s17   ;;  %vm2479_vm8 = vcmp.eq.s32.totalorder %v2465_v34, 1  ;;  %v2483_v8 = vpop.permute.xlu0 %2482  ;;  %vm2477_vm9 = vcmp.eq.s32.totalorder %v2465_v34, 0 }
0x1636   : > { %s294_s19 = scalar_lea.vmem [#allocation6], %s2658_s12  ;;  %v2485_v45 = vsel %vm2479_vm8, %v2483_v8, 0.0  ;;  %s3705_s26 = scalar_lea.hbm %s3747_s6, %s2740_s29 }
0x1637   : > { %s2525_s9 = sshll.u32 %s294_s19, 4  ;;  %s2499_s28 = scalar_lea.sflag [#allocation7], %s3660_s18  ;;  %s2526_s9 = int_to_ptr.vmem [resolvable:$true] %s2525_s9 }
0x1638   : > { %s3167_s13 = scalar_lea.vmem %s2526_s9, 128  ;;  %s3258_s12 = smov [#allocation6]  }
0x1639   : > { %p3168_p9 = scmp.ne.s32.totalorder %s2526_s9, %s3167_s13  ;;  %s3171_s15 = sshll.u32 %s3258_s12, 4  ;;  %s3172_s15 = int_to_ptr.vmem [resolvable:$false] %s3171_s15 }
0x163a   : > { %s3173_s16 = scalar_lea.vmem %s3172_s15, 256  ;;  %p3174_p12 = scmp.lt.s32.totalorder %s2526_s9, %s3172_s15 }
0x163b   : > { %p3169_p10 = pnand %p3168_p9, %p3332_p5  ;;  %p3175_p13 = scmp.lt.s32.totalorder %s3173_s16, %s3167_s13 }
0x163d   : > { %p3170_p11 = pneg %p3169_p10  ;;  %p3176_p0 = por %p3175_p13, %p3174_p12 }
0x163f   : > { %p3177_p1 = pnand %p3176_p0, %p3170_p11 }
0x16a4   : > { %v2489_v46 = vpop.permute.xlu1 %2488 }
0x16a5   : > { %v2491_v47 = vsel %vm2477_vm9, %v2489_v46, %v2485_v45 }
0x16a6   : > { %2492 = vst [vmem:[%s294_s19] sm:$0xff] %v2491_v47 }
0x16a7   : > { %3180 = shalt.err (!%p3177_p1)
}
0x16a8   : > { %s3181_s25 = scalar_lea.hbm %s3705_s26, 128  ;;  %s3185_s17 = scalar_lea.hbm %s3747_s6, 256 }
0x16a9   : > { %p3182_p2 = scmp.ne.s32.totalorder %s3705_s26, %s3181_s25  ;;  %p3186_p7 = scmp.lt.s32.totalorder %s3705_s26, %s3747_s6 }
0x16aa   : > { %p3187_p8 = scmp.lt.s32.totalorder %s3185_s17, %s3181_s25 }
0x16ab   : > { %p3183_p3 = pnand %p3182_p2, %p3332_p5 }
0x16ac   : > { %p3188_p6 = por %p3187_p8, %p3186_p7 }
0x16ad   : > { %p3184_p4 = pneg %p3183_p3 }
0x16af   : > { %p3189_p9 = pnand %p3188_p6, %p3184_p4 }
0x16b1   : > { %3192 = shalt.err (!%p3189_p9)
}
0x16b2   : > { %2972 = dma.vmem_to_hbm [thread:$0]  (%p3332_p5), %s2526_s9, 128, %s3705_s26, %s2499_s28  }
0x16b3 PF: > { %p2988_p10 = scmp.ge.s32.totalorder %s3235_s24, 2  ;;  %s2537_s19 = sand.u32 1, %s3223_s21  }
0x16b4   : > { %p3763_p11 = scmp.ne.s32.totalorder %s3755_s8, 0  ;;  %s2538_s10 = scalar_lea.sflag [#allocation4], %s2537_s19 }
0x16b6   : > { %p2980_p12 = pnand %p2988_p10, %p3763_p11 }
0x16b8   : > { %p2981_p13 = pneg %p2980_p12 }
0x16ba   : > { %3214 = dma.done.wait (%p2981_p13), %s2538_s10, 128  }
0x16bb   : > { %3216 = vsyncadd (%p2981_p13), %s2538_s10, 4294967168  ;;  %s2547_s11 = scalar_lea.sflag [#allocation7], %s2537_s19 }
0x16bc   : > { %3218 = dma.done.wait (%p2981_p13), %s2547_s11, 128  }
0x16bd   : > { %3220 = vsyncadd (%p2981_p13), %s2547_s11, 4294967168  ;;  %p21_p5 = scmp.ge.s32.totalorder %s3319_s27, 4   ;;  %s3764_s21 = smov %s3227_s22 }
0x16be   : > { %s3765_s22 = smov %s3231_s23  ;;  %s3766_s23 = smov %s3330_s30 }
0x16bf   : > { %s3767_s24 = smov %s3319_s27  ;;  %23 = sbr.rel (!%p21_p5) target bundleno = 6 (0x6), region = 103 }
0x16c4   :  { %2552 = vsyncpa [#allocation3], 1 }
0x16c5   :  { %2554 = vsyncpa [#allocation3 + $0x1], 1 }
0x16c6   :  { %2555 = vsyncpa [#allocation4], 1 }
0x16c7   :  { %2557 = vsyncpa [#allocation4 + $0x1], 1 }
0x16c8   :  { %2558 = vsyncpa [#allocation7], 1 }
0x16c9   :  { %2560 = vsyncpa [#allocation7 + $0x1], 1 }

</bundles_post_ra>
